<compile_context>
chip_gen: v5e
topology: v5e:2x2
jax: 0.10.0
libtpu: 0.0.40
codegen_flags: <defaults>
</compile_context>

<pallas_src>
import functools

import jax
import jax.numpy as jnp
from jax.experimental import pallas as pl
from jax.experimental.pallas import tpu as pltpu


def _round_up(v, m):
    return (v + m - 1) // m * m


def _vpu_contract(w, x, bias, n_acc=4):
    """y[n, b] = sum_k w[n, k] * x[k, b] + bias[n, 0] via VPU broadcast FMAs.

    Uses up to `n_acc` interleaved partial accumulators so the contraction is
    not one long serial VALU dependence chain.
    """
    K = w.shape[1]
    n_acc = min(n_acc, K)
    accs = [w[:, a:a + 1] * x[a:a + 1, :] for a in range(n_acc)]
    for k in range(n_acc, K):
        a = k % n_acc
        accs[a] = accs[a] + w[:, k:k + 1] * x[k:k + 1, :]
    y = accs[0]
    for a in range(1, n_acc):
        y = y + accs[a]
    return y + bias


def _d_net_gauss_kernel(xt_ref, w1_ref, b1_ref, w2_ref, b2_ref, w3_ref, b3_ref,
                        out_ref, *, use_mxu):
    """Fused 3-layer MLP discriminator, feature-major layout.

    xt_ref : [z_dim, TB]   input tile, batch on the lane axis (f32)
    w1_ref : [N, z_dim]    (PyTorch [out, in] layout, f32)
    b1_ref : [N, 1]        f32
    w2_ref : [N, N]        bf16 when use_mxu else f32
    b2_ref : [N, 1]        f32
    w3_ref : [N, 1]        (transposed PyTorch [1, N], f32)
    b3_ref : [1, 1]        scalar, SMEM
    out_ref: [1, TB]       lane-dense sigmoid output tile (f32)
    """
    xt = xt_ref[...]                                       # [z_dim, TB]

    # Layer 1: tiny K = z_dim contraction -> VPU broadcast FMAs (no MXU push).
    h1 = _vpu_contract(w1_ref[...], xt, b1_ref[...])       # [N, TB] f32
    h1 = jnp.where(h1 >= 0.0, h1, 0.2 * h1)                # LeakyReLU(0.2); Dropout=id

    # Layer 2: [N, N] x [N, TB].
    if use_mxu:
        # bf16 operands, f32 accumulation: native MXU datapath on v5e/v6e/v7x.
        h2 = jnp.dot(w2_ref[...], h1.astype(w2_ref.dtype),
                     preferred_element_type=jnp.float32) + b2_ref[...]
    else:
        # Small N: the MXU would be almost empty; keep it on the VPU.
        h2 = _vpu_contract(w2_ref[...], h1, b2_ref[...])
    h2 = jnp.where(h2 >= 0.0, h2, 0.2 * h2)

    # Layer 3: N_out = 1 -> elementwise multiply + sublane reduce (VPU + XLU).
    logits = jnp.sum(w3_ref[...] * h2, axis=0, keepdims=True) + b3_ref[0, 0]
    out_ref[...] = jax.nn.sigmoid(logits).astype(out_ref.dtype)   # [1, TB]


def d_net_gauss_forward(x, params, *, tb=8192,
                        vmem_budget_bytes=40 * 1024 * 1024):
    """x: [B, z_dim] float32. params: dict (see init_params). Returns [B, 1]."""
    B, z_dim = x.shape
    w1, b1, w2, b2, w3, b3 = (params["w1"], params["b1"], params["w2"],
                              params["b2"], params["w3"], params["b3"])
    N = w1.shape[0]

    # Large N -> bf16 MXU path; cast w2 once in the wrapper (halves its
    # VMEM-resident footprint and removes a per-step in-kernel convert).
    use_mxu = N >= 128
    if use_mxu:
        w2 = w2.astype(jnp.bfloat16)

    # ---- Batch tile selection -------------------------------------------
    B128 = _round_up(B, 128)
    # VMEM budget: resident weights are double-buffered by the pipeline; each
    # streamed batch column costs ~2 x/out stream bytes + [N,TB] temporaries.
    weight_bytes = 2 * (w1.nbytes + b1.nbytes + w2.nbytes + b2.nbytes + w3.nbytes)
    per_col_bytes = 4 * (2 * z_dim + 2) + 16 * N
    tb_cap = max(128,
                 (max(vmem_budget_bytes - weight_bytes, 0) // per_col_bytes)
                 // 128 * 128)
    TB = min(tb, B128, tb_cap)
    # v7x megacore: "parallel" only helps if the batch axis has >= 2 steps.
    if B128 >= 2 * 128:
        TB = min(TB, _round_up(pl.cdiv(B128, 2), 128))
    B_pad = _round_up(B, TB)
    grid = (B_pad // TB,)

    # Feature-major input: [z_dim, B_pad]  (layout plumbing in the wrapper).
    xt = x.T
    if B_pad != B:
        xt = jnp.pad(xt, ((0, 0), (0, B_pad - B)))

    # Resident (constant-index) specs for weights/biases; streamed x / out.
    resident = lambda shape: pl.BlockSpec(shape, lambda i: (0,) * len(shape))

    cost = pl.CostEstimate(
        flops=2 * B_pad * (z_dim * N + N * N + N),
        transcendentals=B_pad,
        bytes_accessed=(4 * B_pad * z_dim + 4 * B_pad            # streamed x/out
                        + w1.nbytes + b1.nbytes + w2.nbytes      # one-time weight fetch
                        + b2.nbytes + w3.nbytes + b3.nbytes),
    )

    kernel = functools.partial(_d_net_gauss_kernel, use_mxu=use_mxu)

    out_t = pl.pallas_call(
        kernel,
        out_shape=jax.ShapeDtypeStruct((1, B_pad), jnp.float32),
        grid=grid,
        in_specs=[
            pl.BlockSpec((z_dim, TB), lambda i: (0, i)),     # x tile (streams)
            resident(w1.shape),                              # [N, z_dim]
            resident(b1.shape),                              # [N, 1]
            resident(w2.shape),                              # [N, N] (bf16 if MXU)
            resident(b2.shape),                              # [N, 1]
            resident(w3.shape),                              # [N, 1]
            pl.BlockSpec((1, 1), lambda i: (0, 0),           # scalar bias in SMEM
                         memory_space=pltpu.MemorySpace.SMEM),
        ],
        out_specs=pl.BlockSpec((1, TB), lambda i: (0, i)),   # lane-dense output
        compiler_params=pltpu.CompilerParams(
            dimension_semantics=("parallel",),               # megacore on v7x
            vmem_limit_bytes=48 * 1024 * 1024,               # < 64 MiB v7x physical
        ),
        cost_estimate=cost,
    )(xt, w1, b1, w2, b2, w3, b3)

    return out_t[0, :B].reshape(B, 1)


def init_params(key, z_dim, N):
    """PyTorch nn.Linear-style init: U(-1/sqrt(fan_in), 1/sqrt(fan_in)).

    Layouts chosen for the feature-major kernel:
      w1: [N, z_dim], w2: [N, N], w3: [N, 1]; biases as column vectors [*, 1].
    """
    ks = jax.random.split(key, 6)

    def lin(kw, kb, fan_in, fan_out):
        bound = 1.0 / jnp.sqrt(fan_in)
        w = jax.random.uniform(kw, (fan_out, fan_in), jnp.float32, -bound, bound)
        b = jax.random.uniform(kb, (fan_out, 1), jnp.float32, -bound, bound)
        return w, b

    w1, b1 = lin(ks[0], ks[1], z_dim, N)       # [N, z_dim], [N, 1]
    w2, b2 = lin(ks[2], ks[3], N, N)           # [N, N],     [N, 1]
    w3, b3 = lin(ks[4], ks[5], N, 1)           # [1, N],     [1, 1]
    return dict(w1=w1, b1=b1, w2=w2, b2=b2, w3=w3.T, b3=b3)   # w3 stored [N, 1]


def _ref_forward(x, p):
    """Pure-JAX reference (eval-mode Dropout, PyTorch y = x W^T + b)."""
    hi = jax.lax.Precision.HIGHEST
    lrelu = lambda v: jnp.where(v >= 0, v, 0.2 * v)
    h1 = lrelu(jnp.dot(x, p["w1"].T, precision=hi) + p["b1"].T)     # [B, N]
    h2 = lrelu(jnp.dot(h1, p["w2"].T, precision=hi) + p["b2"].T)    # [B, N]
    return jax.nn.sigmoid(jnp.dot(h2, p["w3"], precision=hi) + p["b3"])  # [B, 1]


if __name__ == "__main__":
    key = jax.random.PRNGKey(0)

    # --- Small config (spec-sized): z_dim=2, N=32, B=8 -> VPU-only f32 path.
    z_dim, N, B = 2, 32, 8
    k_param, k_x, k_param2, k_x2 = jax.random.split(key, 4)
    params = init_params(k_param, z_dim, N)
    x = jax.random.normal(k_x, (B, z_dim), dtype=jnp.float32)

    out = jax.block_until_ready(d_net_gauss_forward(x, params))
    expected = _ref_forward(x, params)
    assert out.shape == (B, 1)
    assert jnp.allclose(out, expected, atol=1e-5, rtol=1e-5)

    # --- Larger config: N=256, B=512 -> bf16 MXU path, >=2 grid steps.
    z_dim2, N2, B2 = 2, 256, 512
    params2 = init_params(k_param2, z_dim2, N2)
    x2 = jax.random.normal(k_x2, (B2, z_dim2), dtype=jnp.float32)

    out2 = jax.block_until_ready(d_net_gauss_forward(x2, params2))
    expected2 = _ref_forward(x2, params2)
    assert out2.shape == (B2, 1)
    # bf16 MXU operands -> looser tolerance vs the f32 reference.
    assert jnp.allclose(out2, expected2, atol=3e-2, rtol=0)

    print("KERNEL_OK")
</pallas_src>

<mosaic_0001>
module attributes {stable_mosaic.version = 11 : i64} {
  func.func @_d_net_gauss_kernel(%arg0: i32, %arg1: memref<2x128xf32, #tpu.memory_space<vmem>>, %arg2: memref<32x2xf32, #tpu.memory_space<vmem>>, %arg3: memref<32x1xf32, #tpu.memory_space<vmem>>, %arg4: memref<32x32xf32, #tpu.memory_space<vmem>>, %arg5: memref<32x1xf32, #tpu.memory_space<vmem>>, %arg6: memref<32x1xf32, #tpu.memory_space<vmem>>, %arg7: memref<1x1xf32, #tpu.memory_space<smem>>, %arg8: memref<1x128xf32, #tpu.memory_space<vmem>>) attributes {dimension_semantics = [#tpu.dimension_semantics<parallel>], iteration_bounds = array<i64: 1>, scalar_prefetch = 0 : i64, scratch_operands = 0 : i64, tpu.core_type = #tpu.core_type<tc>, window_params = [{transform_indices = @transform_0, window_bounds = array<i64: 2, 128>}, {pipeline_mode = #tpu.pipeline_mode<synchronous>, transform_indices = @transform_1, window_bounds = array<i64: 32, 2>}, {pipeline_mode = #tpu.pipeline_mode<synchronous>, transform_indices = @transform_2, window_bounds = array<i64: 32, 1>}, {pipeline_mode = #tpu.pipeline_mode<synchronous>, transform_indices = @transform_3, window_bounds = array<i64: 32, 32>}, {pipeline_mode = #tpu.pipeline_mode<synchronous>, transform_indices = @transform_4, window_bounds = array<i64: 32, 1>}, {pipeline_mode = #tpu.pipeline_mode<synchronous>, transform_indices = @transform_5, window_bounds = array<i64: 32, 1>}, {transform_indices = @transform_6, window_bounds = array<i64: 1, 1>}, {transform_indices = @transform_7, window_bounds = array<i64: 1, 128>}]} {
    %c0 = arith.constant 0 : index
    %c0_0 = arith.constant 0 : index
    %0 = vector.load %arg1[%c0, %c0_0] : memref<2x128xf32, #tpu.memory_space<vmem>>, vector<2x128xf32>
    %c0_1 = arith.constant 0 : index
    %c0_2 = arith.constant 0 : index
    %1 = vector.load %arg2[%c0_1, %c0_2] : memref<32x2xf32, #tpu.memory_space<vmem>>, vector<32x2xf32>
    %c0_3 = arith.constant 0 : index
    %c0_4 = arith.constant 0 : index
    %2 = vector.load %arg3[%c0_3, %c0_4] : memref<32x1xf32, #tpu.memory_space<vmem>>, vector<32x1xf32>
    %3 = vector.extract_strided_slice %1 {offsets = [0, 0], sizes = [32, 1], strides = [1, 1]} : vector<32x2xf32> to vector<32x1xf32>
    %4 = vector.extract_strided_slice %0 {offsets = [0, 0], sizes = [1, 128], strides = [1, 1]} : vector<2x128xf32> to vector<1x128xf32>
    %5 = vector.broadcast %3 : vector<32x1xf32> to vector<32x128xf32>
    %6 = vector.broadcast %4 : vector<1x128xf32> to vector<32x128xf32>
    %7 = arith.mulf %5, %6 : vector<32x128xf32>
    %8 = vector.extract_strided_slice %1 {offsets = [0, 1], sizes = [32, 1], strides = [1, 1]} : vector<32x2xf32> to vector<32x1xf32>
    %9 = vector.extract_strided_slice %0 {offsets = [1, 0], sizes = [1, 128], strides = [1, 1]} : vector<2x128xf32> to vector<1x128xf32>
    %10 = vector.broadcast %8 : vector<32x1xf32> to vector<32x128xf32>
    %11 = vector.broadcast %9 : vector<1x128xf32> to vector<32x128xf32>
    %12 = arith.mulf %10, %11 : vector<32x128xf32>
    %13 = arith.addf %7, %12 : vector<32x128xf32>
    %14 = vector.broadcast %2 : vector<32x1xf32> to vector<32x128xf32>
    %15 = arith.addf %13, %14 : vector<32x128xf32>
    %cst = arith.constant 0.000000e+00 : f32
    %16 = vector.broadcast %cst : f32 to vector<32x128xf32>
    %17 = arith.cmpf oge, %15, %16 : vector<32x128xf32>
    %cst_5 = arith.constant 2.000000e-01 : f32
    %18 = vector.broadcast %cst_5 : f32 to vector<32x128xf32>
    %19 = arith.mulf %18, %15 : vector<32x128xf32>
    %20 = arith.select %17, %15, %19 : vector<32x128xi1>, vector<32x128xf32>
    %c0_6 = arith.constant 0 : index
    %c0_7 = arith.constant 0 : index
    %21 = vector.load %arg4[%c0_6, %c0_7] : memref<32x32xf32, #tpu.memory_space<vmem>>, vector<32x32xf32>
    %c0_8 = arith.constant 0 : index
    %c0_9 = arith.constant 0 : index
    %22 = vector.load %arg5[%c0_8, %c0_9] : memref<32x1xf32, #tpu.memory_space<vmem>>, vector<32x1xf32>
    %23 = vector.extract_strided_slice %21 {offsets = [0, 0], sizes = [32, 1], strides = [1, 1]} : vector<32x32xf32> to vector<32x1xf32>
    %24 = vector.extract_strided_slice %20 {offsets = [0, 0], sizes = [1, 128], strides = [1, 1]} : vector<32x128xf32> to vector<1x128xf32>
    %25 = vector.broadcast %23 : vector<32x1xf32> to vector<32x128xf32>
    %26 = vector.broadcast %24 : vector<1x128xf32> to vector<32x128xf32>
    %27 = arith.mulf %25, %26 : vector<32x128xf32>
    %28 = vector.extract_strided_slice %21 {offsets = [0, 1], sizes = [32, 1], strides = [1, 1]} : vector<32x32xf32> to vector<32x1xf32>
    %29 = vector.extract_strided_slice %20 {offsets = [1, 0], sizes = [1, 128], strides = [1, 1]} : vector<32x128xf32> to vector<1x128xf32>
    %30 = vector.broadcast %28 : vector<32x1xf32> to vector<32x128xf32>
    %31 = vector.broadcast %29 : vector<1x128xf32> to vector<32x128xf32>
    %32 = arith.mulf %30, %31 : vector<32x128xf32>
    %33 = vector.extract_strided_slice %21 {offsets = [0, 2], sizes = [32, 1], strides = [1, 1]} : vector<32x32xf32> to vector<32x1xf32>
    %34 = vector.extract_strided_slice %20 {offsets = [2, 0], sizes = [1, 128], strides = [1, 1]} : vector<32x128xf32> to vector<1x128xf32>
    %35 = vector.broadcast %33 : vector<32x1xf32> to vector<32x128xf32>
    %36 = vector.broadcast %34 : vector<1x128xf32> to vector<32x128xf32>
    %37 = arith.mulf %35, %36 : vector<32x128xf32>
    %38 = vector.extract_strided_slice %21 {offsets = [0, 3], sizes = [32, 1], strides = [1, 1]} : vector<32x32xf32> to vector<32x1xf32>
    %39 = vector.extract_strided_slice %20 {offsets = [3, 0], sizes = [1, 128], strides = [1, 1]} : vector<32x128xf32> to vector<1x128xf32>
    %40 = vector.broadcast %38 : vector<32x1xf32> to vector<32x128xf32>
    %41 = vector.broadcast %39 : vector<1x128xf32> to vector<32x128xf32>
    %42 = arith.mulf %40, %41 : vector<32x128xf32>
    %43 = vector.extract_strided_slice %21 {offsets = [0, 4], sizes = [32, 1], strides = [1, 1]} : vector<32x32xf32> to vector<32x1xf32>
    %44 = vector.extract_strided_slice %20 {offsets = [4, 0], sizes = [1, 128], strides = [1, 1]} : vector<32x128xf32> to vector<1x128xf32>
    %45 = vector.broadcast %43 : vector<32x1xf32> to vector<32x128xf32>
    %46 = vector.broadcast %44 : vector<1x128xf32> to vector<32x128xf32>
    %47 = arith.mulf %45, %46 : vector<32x128xf32>
    %48 = arith.addf %27, %47 : vector<32x128xf32>
    %49 = vector.extract_strided_slice %21 {offsets = [0, 5], sizes = [32, 1], strides = [1, 1]} : vector<32x32xf32> to vector<32x1xf32>
    %50 = vector.extract_strided_slice %20 {offsets = [5, 0], sizes = [1, 128], strides = [1, 1]} : vector<32x128xf32> to vector<1x128xf32>
    %51 = vector.broadcast %49 : vector<32x1xf32> to vector<32x128xf32>
    %52 = vector.broadcast %50 : vector<1x128xf32> to vector<32x128xf32>
    %53 = arith.mulf %51, %52 : vector<32x128xf32>
    %54 = arith.addf %32, %53 : vector<32x128xf32>
    %55 = vector.extract_strided_slice %21 {offsets = [0, 6], sizes = [32, 1], strides = [1, 1]} : vector<32x32xf32> to vector<32x1xf32>
    %56 = vector.extract_strided_slice %20 {offsets = [6, 0], sizes = [1, 128], strides = [1, 1]} : vector<32x128xf32> to vector<1x128xf32>
    %57 = vector.broadcast %55 : vector<32x1xf32> to vector<32x128xf32>
    %58 = vector.broadcast %56 : vector<1x128xf32> to vector<32x128xf32>
    %59 = arith.mulf %57, %58 : vector<32x128xf32>
    %60 = arith.addf %37, %59 : vector<32x128xf32>
    %61 = vector.extract_strided_slice %21 {offsets = [0, 7], sizes = [32, 1], strides = [1, 1]} : vector<32x32xf32> to vector<32x1xf32>
    %62 = vector.extract_strided_slice %20 {offsets = [7, 0], sizes = [1, 128], strides = [1, 1]} : vector<32x128xf32> to vector<1x128xf32>
    %63 = vector.broadcast %61 : vector<32x1xf32> to vector<32x128xf32>
    %64 = vector.broadcast %62 : vector<1x128xf32> to vector<32x128xf32>
    %65 = arith.mulf %63, %64 : vector<32x128xf32>
    %66 = arith.addf %42, %65 : vector<32x128xf32>
    %67 = vector.extract_strided_slice %21 {offsets = [0, 8], sizes = [32, 1], strides = [1, 1]} : vector<32x32xf32> to vector<32x1xf32>
    %68 = vector.extract_strided_slice %20 {offsets = [8, 0], sizes = [1, 128], strides = [1, 1]} : vector<32x128xf32> to vector<1x128xf32>
    %69 = vector.broadcast %67 : vector<32x1xf32> to vector<32x128xf32>
    %70 = vector.broadcast %68 : vector<1x128xf32> to vector<32x128xf32>
    %71 = arith.mulf %69, %70 : vector<32x128xf32>
    %72 = arith.addf %48, %71 : vector<32x128xf32>
    %73 = vector.extract_strided_slice %21 {offsets = [0, 9], sizes = [32, 1], strides = [1, 1]} : vector<32x32xf32> to vector<32x1xf32>
    %74 = vector.extract_strided_slice %20 {offsets = [9, 0], sizes = [1, 128], strides = [1, 1]} : vector<32x128xf32> to vector<1x128xf32>
    %75 = vector.broadcast %73 : vector<32x1xf32> to vector<32x128xf32>
    %76 = vector.broadcast %74 : vector<1x128xf32> to vector<32x128xf32>
    %77 = arith.mulf %75, %76 : vector<32x128xf32>
    %78 = arith.addf %54, %77 : vector<32x128xf32>
    %79 = vector.extract_strided_slice %21 {offsets = [0, 10], sizes = [32, 1], strides = [1, 1]} : vector<32x32xf32> to vector<32x1xf32>
    %80 = vector.extract_strided_slice %20 {offsets = [10, 0], sizes = [1, 128], strides = [1, 1]} : vector<32x128xf32> to vector<1x128xf32>
    %81 = vector.broadcast %79 : vector<32x1xf32> to vector<32x128xf32>
    %82 = vector.broadcast %80 : vector<1x128xf32> to vector<32x128xf32>
    %83 = arith.mulf %81, %82 : vector<32x128xf32>
    %84 = arith.addf %60, %83 : vector<32x128xf32>
    %85 = vector.extract_strided_slice %21 {offsets = [0, 11], sizes = [32, 1], strides = [1, 1]} : vector<32x32xf32> to vector<32x1xf32>
    %86 = vector.extract_strided_slice %20 {offsets = [11, 0], sizes = [1, 128], strides = [1, 1]} : vector<32x128xf32> to vector<1x128xf32>
    %87 = vector.broadcast %85 : vector<32x1xf32> to vector<32x128xf32>
    %88 = vector.broadcast %86 : vector<1x128xf32> to vector<32x128xf32>
    %89 = arith.mulf %87, %88 : vector<32x128xf32>
    %90 = arith.addf %66, %89 : vector<32x128xf32>
    %91 = vector.extract_strided_slice %21 {offsets = [0, 12], sizes = [32, 1], strides = [1, 1]} : vector<32x32xf32> to vector<32x1xf32>
    %92 = vector.extract_strided_slice %20 {offsets = [12, 0], sizes = [1, 128], strides = [1, 1]} : vector<32x128xf32> to vector<1x128xf32>
    %93 = vector.broadcast %91 : vector<32x1xf32> to vector<32x128xf32>
    %94 = vector.broadcast %92 : vector<1x128xf32> to vector<32x128xf32>
    %95 = arith.mulf %93, %94 : vector<32x128xf32>
    %96 = arith.addf %72, %95 : vector<32x128xf32>
    %97 = vector.extract_strided_slice %21 {offsets = [0, 13], sizes = [32, 1], strides = [1, 1]} : vector<32x32xf32> to vector<32x1xf32>
    %98 = vector.extract_strided_slice %20 {offsets = [13, 0], sizes = [1, 128], strides = [1, 1]} : vector<32x128xf32> to vector<1x128xf32>
    %99 = vector.broadcast %97 : vector<32x1xf32> to vector<32x128xf32>
    %100 = vector.broadcast %98 : vector<1x128xf32> to vector<32x128xf32>
    %101 = arith.mulf %99, %100 : vector<32x128xf32>
    %102 = arith.addf %78, %101 : vector<32x128xf32>
    %103 = vector.extract_strided_slice %21 {offsets = [0, 14], sizes = [32, 1], strides = [1, 1]} : vector<32x32xf32> to vector<32x1xf32>
    %104 = vector.extract_strided_slice %20 {offsets = [14, 0], sizes = [1, 128], strides = [1, 1]} : vector<32x128xf32> to vector<1x128xf32>
    %105 = vector.broadcast %103 : vector<32x1xf32> to vector<32x128xf32>
    %106 = vector.broadcast %104 : vector<1x128xf32> to vector<32x128xf32>
    %107 = arith.mulf %105, %106 : vector<32x128xf32>
    %108 = arith.addf %84, %107 : vector<32x128xf32>
    %109 = vector.extract_strided_slice %21 {offsets = [0, 15], sizes = [32, 1], strides = [1, 1]} : vector<32x32xf32> to vector<32x1xf32>
    %110 = vector.extract_strided_slice %20 {offsets = [15, 0], sizes = [1, 128], strides = [1, 1]} : vector<32x128xf32> to vector<1x128xf32>
    %111 = vector.broadcast %109 : vector<32x1xf32> to vector<32x128xf32>
    %112 = vector.broadcast %110 : vector<1x128xf32> to vector<32x128xf32>
    %113 = arith.mulf %111, %112 : vector<32x128xf32>
    %114 = arith.addf %90, %113 : vector<32x128xf32>
    %115 = vector.extract_strided_slice %21 {offsets = [0, 16], sizes = [32, 1], strides = [1, 1]} : vector<32x32xf32> to vector<32x1xf32>
    %116 = vector.extract_strided_slice %20 {offsets = [16, 0], sizes = [1, 128], strides = [1, 1]} : vector<32x128xf32> to vector<1x128xf32>
    %117 = vector.broadcast %115 : vector<32x1xf32> to vector<32x128xf32>
    %118 = vector.broadcast %116 : vector<1x128xf32> to vector<32x128xf32>
    %119 = arith.mulf %117, %118 : vector<32x128xf32>
    %120 = arith.addf %96, %119 : vector<32x128xf32>
    %121 = vector.extract_strided_slice %21 {offsets = [0, 17], sizes = [32, 1], strides = [1, 1]} : vector<32x32xf32> to vector<32x1xf32>
    %122 = vector.extract_strided_slice %20 {offsets = [17, 0], sizes = [1, 128], strides = [1, 1]} : vector<32x128xf32> to vector<1x128xf32>
    %123 = vector.broadcast %121 : vector<32x1xf32> to vector<32x128xf32>
    %124 = vector.broadcast %122 : vector<1x128xf32> to vector<32x128xf32>
    %125 = arith.mulf %123, %124 : vector<32x128xf32>
    %126 = arith.addf %102, %125 : vector<32x128xf32>
    %127 = vector.extract_strided_slice %21 {offsets = [0, 18], sizes = [32, 1], strides = [1, 1]} : vector<32x32xf32> to vector<32x1xf32>
    %128 = vector.extract_strided_slice %20 {offsets = [18, 0], sizes = [1, 128], strides = [1, 1]} : vector<32x128xf32> to vector<1x128xf32>
    %129 = vector.broadcast %127 : vector<32x1xf32> to vector<32x128xf32>
    %130 = vector.broadcast %128 : vector<1x128xf32> to vector<32x128xf32>
    %131 = arith.mulf %129, %130 : vector<32x128xf32>
    %132 = arith.addf %108, %131 : vector<32x128xf32>
    %133 = vector.extract_strided_slice %21 {offsets = [0, 19], sizes = [32, 1], strides = [1, 1]} : vector<32x32xf32> to vector<32x1xf32>
    %134 = vector.extract_strided_slice %20 {offsets = [19, 0], sizes = [1, 128], strides = [1, 1]} : vector<32x128xf32> to vector<1x128xf32>
    %135 = vector.broadcast %133 : vector<32x1xf32> to vector<32x128xf32>
    %136 = vector.broadcast %134 : vector<1x128xf32> to vector<32x128xf32>
    %137 = arith.mulf %135, %136 : vector<32x128xf32>
    %138 = arith.addf %114, %137 : vector<32x128xf32>
    %139 = vector.extract_strided_slice %21 {offsets = [0, 20], sizes = [32, 1], strides = [1, 1]} : vector<32x32xf32> to vector<32x1xf32>
    %140 = vector.extract_strided_slice %20 {offsets = [20, 0], sizes = [1, 128], strides = [1, 1]} : vector<32x128xf32> to vector<1x128xf32>
    %141 = vector.broadcast %139 : vector<32x1xf32> to vector<32x128xf32>
    %142 = vector.broadcast %140 : vector<1x128xf32> to vector<32x128xf32>
    %143 = arith.mulf %141, %142 : vector<32x128xf32>
    %144 = arith.addf %120, %143 : vector<32x128xf32>
    %145 = vector.extract_strided_slice %21 {offsets = [0, 21], sizes = [32, 1], strides = [1, 1]} : vector<32x32xf32> to vector<32x1xf32>
    %146 = vector.extract_strided_slice %20 {offsets = [21, 0], sizes = [1, 128], strides = [1, 1]} : vector<32x128xf32> to vector<1x128xf32>
    %147 = vector.broadcast %145 : vector<32x1xf32> to vector<32x128xf32>
    %148 = vector.broadcast %146 : vector<1x128xf32> to vector<32x128xf32>
    %149 = arith.mulf %147, %148 : vector<32x128xf32>
    %150 = arith.addf %126, %149 : vector<32x128xf32>
    %151 = vector.extract_strided_slice %21 {offsets = [0, 22], sizes = [32, 1], strides = [1, 1]} : vector<32x32xf32> to vector<32x1xf32>
    %152 = vector.extract_strided_slice %20 {offsets = [22, 0], sizes = [1, 128], strides = [1, 1]} : vector<32x128xf32> to vector<1x128xf32>
    %153 = vector.broadcast %151 : vector<32x1xf32> to vector<32x128xf32>
    %154 = vector.broadcast %152 : vector<1x128xf32> to vector<32x128xf32>
    %155 = arith.mulf %153, %154 : vector<32x128xf32>
    %156 = arith.addf %132, %155 : vector<32x128xf32>
    %157 = vector.extract_strided_slice %21 {offsets = [0, 23], sizes = [32, 1], strides = [1, 1]} : vector<32x32xf32> to vector<32x1xf32>
    %158 = vector.extract_strided_slice %20 {offsets = [23, 0], sizes = [1, 128], strides = [1, 1]} : vector<32x128xf32> to vector<1x128xf32>
    %159 = vector.broadcast %157 : vector<32x1xf32> to vector<32x128xf32>
    %160 = vector.broadcast %158 : vector<1x128xf32> to vector<32x128xf32>
    %161 = arith.mulf %159, %160 : vector<32x128xf32>
    %162 = arith.addf %138, %161 : vector<32x128xf32>
    %163 = vector.extract_strided_slice %21 {offsets = [0, 24], sizes = [32, 1], strides = [1, 1]} : vector<32x32xf32> to vector<32x1xf32>
    %164 = vector.extract_strided_slice %20 {offsets = [24, 0], sizes = [1, 128], strides = [1, 1]} : vector<32x128xf32> to vector<1x128xf32>
    %165 = vector.broadcast %163 : vector<32x1xf32> to vector<32x128xf32>
    %166 = vector.broadcast %164 : vector<1x128xf32> to vector<32x128xf32>
    %167 = arith.mulf %165, %166 : vector<32x128xf32>
    %168 = arith.addf %144, %167 : vector<32x128xf32>
    %169 = vector.extract_strided_slice %21 {offsets = [0, 25], sizes = [32, 1], strides = [1, 1]} : vector<32x32xf32> to vector<32x1xf32>
    %170 = vector.extract_strided_slice %20 {offsets = [25, 0], sizes = [1, 128], strides = [1, 1]} : vector<32x128xf32> to vector<1x128xf32>
    %171 = vector.broadcast %169 : vector<32x1xf32> to vector<32x128xf32>
    %172 = vector.broadcast %170 : vector<1x128xf32> to vector<32x128xf32>
    %173 = arith.mulf %171, %172 : vector<32x128xf32>
    %174 = arith.addf %150, %173 : vector<32x128xf32>
    %175 = vector.extract_strided_slice %21 {offsets = [0, 26], sizes = [32, 1], strides = [1, 1]} : vector<32x32xf32> to vector<32x1xf32>
    %176 = vector.extract_strided_slice %20 {offsets = [26, 0], sizes = [1, 128], strides = [1, 1]} : vector<32x128xf32> to vector<1x128xf32>
    %177 = vector.broadcast %175 : vector<32x1xf32> to vector<32x128xf32>
    %178 = vector.broadcast %176 : vector<1x128xf32> to vector<32x128xf32>
    %179 = arith.mulf %177, %178 : vector<32x128xf32>
    %180 = arith.addf %156, %179 : vector<32x128xf32>
    %181 = vector.extract_strided_slice %21 {offsets = [0, 27], sizes = [32, 1], strides = [1, 1]} : vector<32x32xf32> to vector<32x1xf32>
    %182 = vector.extract_strided_slice %20 {offsets = [27, 0], sizes = [1, 128], strides = [1, 1]} : vector<32x128xf32> to vector<1x128xf32>
    %183 = vector.broadcast %181 : vector<32x1xf32> to vector<32x128xf32>
    %184 = vector.broadcast %182 : vector<1x128xf32> to vector<32x128xf32>
    %185 = arith.mulf %183, %184 : vector<32x128xf32>
    %186 = arith.addf %162, %185 : vector<32x128xf32>
    %187 = vector.extract_strided_slice %21 {offsets = [0, 28], sizes = [32, 1], strides = [1, 1]} : vector<32x32xf32> to vector<32x1xf32>
    %188 = vector.extract_strided_slice %20 {offsets = [28, 0], sizes = [1, 128], strides = [1, 1]} : vector<32x128xf32> to vector<1x128xf32>
    %189 = vector.broadcast %187 : vector<32x1xf32> to vector<32x128xf32>
    %190 = vector.broadcast %188 : vector<1x128xf32> to vector<32x128xf32>
    %191 = arith.mulf %189, %190 : vector<32x128xf32>
    %192 = arith.addf %168, %191 : vector<32x128xf32>
    %193 = vector.extract_strided_slice %21 {offsets = [0, 29], sizes = [32, 1], strides = [1, 1]} : vector<32x32xf32> to vector<32x1xf32>
    %194 = vector.extract_strided_slice %20 {offsets = [29, 0], sizes = [1, 128], strides = [1, 1]} : vector<32x128xf32> to vector<1x128xf32>
    %195 = vector.broadcast %193 : vector<32x1xf32> to vector<32x128xf32>
    %196 = vector.broadcast %194 : vector<1x128xf32> to vector<32x128xf32>
    %197 = arith.mulf %195, %196 : vector<32x128xf32>
    %198 = arith.addf %174, %197 : vector<32x128xf32>
    %199 = vector.extract_strided_slice %21 {offsets = [0, 30], sizes = [32, 1], strides = [1, 1]} : vector<32x32xf32> to vector<32x1xf32>
    %200 = vector.extract_strided_slice %20 {offsets = [30, 0], sizes = [1, 128], strides = [1, 1]} : vector<32x128xf32> to vector<1x128xf32>
    %201 = vector.broadcast %199 : vector<32x1xf32> to vector<32x128xf32>
    %202 = vector.broadcast %200 : vector<1x128xf32> to vector<32x128xf32>
    %203 = arith.mulf %201, %202 : vector<32x128xf32>
    %204 = arith.addf %180, %203 : vector<32x128xf32>
    %205 = vector.extract_strided_slice %21 {offsets = [0, 31], sizes = [32, 1], strides = [1, 1]} : vector<32x32xf32> to vector<32x1xf32>
    %206 = vector.extract_strided_slice %20 {offsets = [31, 0], sizes = [1, 128], strides = [1, 1]} : vector<32x128xf32> to vector<1x128xf32>
    %207 = vector.broadcast %205 : vector<32x1xf32> to vector<32x128xf32>
    %208 = vector.broadcast %206 : vector<1x128xf32> to vector<32x128xf32>
    %209 = arith.mulf %207, %208 : vector<32x128xf32>
    %210 = arith.addf %186, %209 : vector<32x128xf32>
    %211 = arith.addf %192, %198 : vector<32x128xf32>
    %212 = arith.addf %211, %204 : vector<32x128xf32>
    %213 = arith.addf %212, %210 : vector<32x128xf32>
    %214 = vector.broadcast %22 : vector<32x1xf32> to vector<32x128xf32>
    %215 = arith.addf %213, %214 : vector<32x128xf32>
    %cst_10 = arith.constant 0.000000e+00 : f32
    %216 = vector.broadcast %cst_10 : f32 to vector<32x128xf32>
    %217 = arith.cmpf oge, %215, %216 : vector<32x128xf32>
    %cst_11 = arith.constant 2.000000e-01 : f32
    %218 = vector.broadcast %cst_11 : f32 to vector<32x128xf32>
    %219 = arith.mulf %218, %215 : vector<32x128xf32>
    %220 = arith.select %217, %215, %219 : vector<32x128xi1>, vector<32x128xf32>
    %c0_12 = arith.constant 0 : index
    %c0_13 = arith.constant 0 : index
    %221 = vector.load %arg6[%c0_12, %c0_13] : memref<32x1xf32, #tpu.memory_space<vmem>>, vector<32x1xf32>
    %222 = vector.broadcast %221 : vector<32x1xf32> to vector<32x128xf32>
    %223 = arith.mulf %222, %220 : vector<32x128xf32>
    %cst_14 = arith.constant dense<0.000000e+00> : vector<128xf32>
    %224 = vector.multi_reduction <add>, %223, %cst_14 [0] : vector<32x128xf32> to vector<128xf32>
    %225 = vector.shape_cast %224 : vector<128xf32> to vector<1x128xf32>
    %c0_15 = arith.constant 0 : index
    %c0_16 = arith.constant 0 : index
    %226 = memref.load %arg7[%c0_15, %c0_16] : memref<1x1xf32, #tpu.memory_space<smem>>
    %227 = vector.broadcast %226 : f32 to vector<1x128xf32>
    %228 = arith.addf %225, %227 : vector<1x128xf32>
    %229 = arith.negf %228 : vector<1x128xf32>
    %230 = math.exp %229 : vector<1x128xf32>
    %cst_17 = arith.constant 1.000000e+00 : f32
    %231 = vector.broadcast %cst_17 : f32 to vector<1x128xf32>
    %232 = arith.addf %231, %230 : vector<1x128xf32>
    %233 = arith.divf %231, %232 : vector<1x128xf32>
    %c0_18 = arith.constant 0 : index
    %c0_19 = arith.constant 0 : index
    %234 = vector.load %arg8[%c0_18, %c0_19] : memref<1x128xf32, #tpu.memory_space<vmem>>, vector<1x128xf32>
    tpu.vector_store %arg8[%c0_18, %c0_19], %233 {strides = array<i32>} : memref<1x128xf32, #tpu.memory_space<vmem>>, vector<1x128xf32>,
    return
  }
  func.func @transform_0(%arg0: i32) -> (i32, i32) {
    %c0_i32 = arith.constant 0 : i32
    %c0_i32_0 = arith.constant 0 : i32
    return %c0_i32, %arg0 : i32, i32
  }
  func.func @transform_1(%arg0: i32) -> (i32, i32) {
    %c0_i32 = arith.constant 0 : i32
    %c0_i32_0 = arith.constant 0 : i32
    %c0_i32_1 = arith.constant 0 : i32
    return %c0_i32, %c0_i32_0 : i32, i32
  }
  func.func @transform_2(%arg0: i32) -> (i32, i32) {
    %c0_i32 = arith.constant 0 : i32
    %c0_i32_0 = arith.constant 0 : i32
    %c0_i32_1 = arith.constant 0 : i32
    return %c0_i32, %c0_i32_0 : i32, i32
  }
  func.func @transform_3(%arg0: i32) -> (i32, i32) {
    %c0_i32 = arith.constant 0 : i32
    %c0_i32_0 = arith.constant 0 : i32
    %c0_i32_1 = arith.constant 0 : i32
    return %c0_i32, %c0_i32_0 : i32, i32
  }
  func.func @transform_4(%arg0: i32) -> (i32, i32) {
    %c0_i32 = arith.constant 0 : i32
    %c0_i32_0 = arith.constant 0 : i32
    %c0_i32_1 = arith.constant 0 : i32
    return %c0_i32, %c0_i32_0 : i32, i32
  }
  func.func @transform_5(%arg0: i32) -> (i32, i32) {
    %c0_i32 = arith.constant 0 : i32
    %c0_i32_0 = arith.constant 0 : i32
    %c0_i32_1 = arith.constant 0 : i32
    return %c0_i32, %c0_i32_0 : i32, i32
  }
  func.func @transform_6(%arg0: i32) -> (i32, i32) {
    %c0_i32 = arith.constant 0 : i32
    %c0_i32_0 = arith.constant 0 : i32
    %c0_i32_1 = arith.constant 0 : i32
    return %c0_i32, %c0_i32_0 : i32, i32
  }
  func.func @transform_7(%arg0: i32) -> (i32, i32) {
    %c0_i32 = arith.constant 0 : i32
    %c0_i32_0 = arith.constant 0 : i32
    return %c0_i32, %arg0 : i32, i32
  }
}

</mosaic_0001>

<bundles_post_ra>
// kernel: tpu_custom_call.1
= control target key start
LH: loop header
LB: loop body
LE: loop exit
PB: predicated region body
PF: predicated region fallthrough
CT: control target
= control target key end

     0   :  { %v1206_v2 = vmov 1   ;;  %v1207_v3 = vmov 0   ;;  %s1950_s0 = inlined_call_operand.vmem [shape: f32[2,128], index: 0, kind: input, shape index: {}]   ;;  %s1951_s1 = inlined_call_operand.vmem [shape: f32[32,2], index: 1, kind: input, shape index: {}]   ;;  %s1952_s2 = inlined_call_operand.vmem [shape: f32[32,1], index: 2, kind: input, shape index: {}]   ;;  %s1953_s3 = inlined_call_operand.vmem [shape: f32[32,32], index: 3, kind: input, shape index: {}]   ;;  %s1954_s4 = inlined_call_operand.vmem [shape: f32[32,1], index: 4, kind: input, shape index: {}]   ;;  %s1955_s5 = inlined_call_operand.vmem [shape: f32[32,1], index: 5, kind: input, shape index: {}]   ;;  %s1956_s6 = inlined_call_operand.<no memory space> [shape: f32[1,1], index: 6, kind: input, shape index: {}]   ;;  %s1957_s7 = inlined_call_operand.hbm [shape: f32[1,128], index: 7, kind: output, shape index: {}]  }
   0x1   :  { %v31_v0 = vld [vmem:[%s1951_s1 + $0x10] sm:$0xff]  ;;  %v29_v1 = vld [vmem:[%s1951_s1] sm:$0xff]  ;;  %1079 = vset.pattern.permute.xlu2 %v1206_v2  ;;  %1078 = vset.pattern.permute.xlu1 %v1207_v3 }
   0x2   :  { %1077 = vset.pattern.permute.xlu0 %v1207_v3  ;;  %49 = vperm.xlu1 %1078, %v31_v0  }
   0x3   :  { %63 = vperm.xlu2 %1079, %v29_v1   ;;  %39 = vperm.xlu0 %1077, %v29_v1  }
   0x4   :  { %13 = vsyncpa [#allocation4], 0  ;;  %v32_v4 = vld [vmem:[%s1951_s1 + $0x18] sm:$0xff]  ;;  %v30_v5 = vld [vmem:[%s1951_s1 + $0x8] sm:$0xff]  ;;  %v1208_v14 = vmov 2   ;;  %v1209_v15 = vmov 3  }
   0x5   :  { %v36_v6 = vld [vmem:[%s1952_s2 + $0x18] sm:$0xff]  ;;  %v33_v7 = vld [vmem:[%s1952_s2] sm:$0xff]  ;;  %v35_v8 = vld [vmem:[%s1952_s2 + $0x10] sm:$0xff]  ;;  %v1210_v16 = vmov 4   ;;  %v1211_v17 = vmov 6   ;;  %v1212_v18 = vmov 7  }
   0x6   :  { %v34_v9 = vld [vmem:[%s1952_s2 + $0x8] sm:$0xff]  ;;  %v1315_v11 = vld [vmem:[%s1953_s3] sm:$0xff]  ;;  %v1323_v12 = vld [vmem:[%s1953_s3 + $0x18] sm:$0xff]  ;;  %v1213_v19 = vmov 8   ;;  %v1214_v21 = vmov 9   ;;  %v1215_v23 = vmov 5  }
   0x7   :  { %v1310_v10 = vld [vmem:[%s1953_s3 + $0x8] sm:$0xff]  ;;  %v1328_v13 = vld [vmem:[%s1953_s3 + $0x10] sm:$0xff]  ;;  %v1216_v24 = vmov 11   ;;  %v1217_v27 = vmov 12   ;;  %v28_v32 = vld [vmem:[%s1950_s0] sm:$0x3] }
   0x8   :  { %v1218_v33 = vmov 13   ;;  %v1379_v35 = vperm.slane %v28_v32, 1  ;;  %v1382_v36 = vperm.slane %v28_v32, 0  ;;  %v1219_v43 = vmov 14   ;;  %s1238_s22 = smov [#allocation3]  }
   0x9   :  { %v1220_v49 = vmov 16   ;;  %v1221_v56 = vmov 17   ;;  %v1222_v62 = vmov 18   ;;  %s1032_s23 = sshll.u32 %s1238_s22, 4  ;;  %s1033_s23 = int_to_ptr.vmem [resolvable:$true] %s1032_s23 }
   0xa   :  { %54 = vperm.xlu1 %1078, %v32_v4  }
   0xb   :  { %67 = vperm.xlu2 %1079, %v30_v5   ;;  %44 = vperm.xlu0 %1077, %v30_v5  }
  0x12   :  { %1080 = vset.pattern.permute.xlu1 %v1206_v2 }
  0x13   :  { %1081 = vset.pattern.permute.xlu2 %v1207_v3  ;;  %104 = vperm.xlu0 %1077, %v36_v6   ;;  %v1223_v6 = vmov 19  }
  0x14   :  { %75 = vperm.xlu1 %1080, %v32_v4   ;;  %89 = vperm.xlu2 %1081, %v33_v7   ;;  %v1224_v7 = vmov 10  }
  0x1b   :  { %1083 = vset.pattern.permute.xlu0 %v1206_v2 }
  0x1c   :  { %1082 = vset.pattern.permute.xlu1 %v1207_v3  ;;  %99 = vperm.xlu2 %1081, %v35_v8  }
  0x1d   :  { %71 = vperm.xlu0 %1083, %v31_v0   ;;  %94 = vperm.xlu1 %1082, %v34_v9  }
  0x24   :  { %138 = vperm.xlu2 %1081, %v1310_v10  }
  0x25   :  { %157 = vperm.xlu0 %1083, %v1315_v11   ;;  %133 = vperm.xlu1 %1082, %v1315_v11  }
  0x2c   :  { %148 = vperm.xlu2 %1081, %v1323_v12  }
  0x2d   :  { %1087 = vset.pattern.permute.xlu0 %v1208_v14  ;;  %143 = vperm.xlu1 %1082, %v1328_v13  }
  0x2e   :  { %182 = vperm.xlu0 %1087, %v1310_v10  }
  0x34   :  { %1085 = vset.pattern.permute.xlu2 %v1206_v2 }
  0x35   :  { %1084 = vset.pattern.permute.xlu1 %v1206_v2  ;;  %165 = vperm.xlu2 %1085, %v1328_v13  }
  0x36   :  { %1091 = vset.pattern.permute.xlu0 %v1209_v15  ;;  %161 = vperm.xlu1 %1084, %v1310_v10  }
  0x37   :  { %207 = vperm.xlu0 %1091, %v1328_v13  }
  0x3d   :  { %1086 = vset.pattern.permute.xlu2 %v1208_v14 }
  0x3e   :  { %169 = vperm.xlu1 %1084, %v1323_v12   ;;  %178 = vperm.xlu2 %1086, %v1315_v11  }
  0x3f   :  { %1094 = vset.pattern.permute.xlu0 %v1210_v16 }
  0x40   :  { %232 = vperm.xlu0 %1094, %v1323_v12  }
  0x46   :  { %1088 = vset.pattern.permute.xlu1 %v1208_v14  ;;  %190 = vperm.xlu2 %1086, %v1323_v12  }
  0x47   :  { %186 = vperm.xlu1 %1088, %v1328_v13  }
  0x48   :  { %1097 = vset.pattern.permute.xlu0 %v1211_v17 }
  0x49   :  { %270 = vperm.xlu0 %1097, %v1315_v11  }
  0x4e   :  { %1090 = vset.pattern.permute.xlu2 %v1209_v15 }
  0x4f   :  { %1089 = vset.pattern.permute.xlu1 %v1209_v15  ;;  %203 = vperm.xlu2 %1090, %v1310_v10  }
  0x50   :  { %199 = vperm.xlu1 %1089, %v1315_v11  }
  0x51   :  { %1101 = vset.pattern.permute.xlu0 %v1212_v18 }
  0x52   :  { %299 = vperm.xlu0 %1101, %v1310_v10  }
  0x57   :  { %1092 = vset.pattern.permute.xlu2 %v1210_v16 }
  0x58   :  { %211 = vperm.xlu1 %1089, %v1323_v12   ;;  %220 = vperm.xlu2 %1092, %v1315_v11  }
  0x5a   :  { %1105 = vset.pattern.permute.xlu0 %v1213_v19 }
  0x5b   :  { %328 = vperm.xlu0 %1105, %v1328_v13  }
  0x5d   :  { %v64_v20 = vpop.permute.xlu2 %63 }
  0x5e   :  { %v79_v37 = vmul.f32 %v1379_v35, %v64_v20 }
  0x60   :  { %1093 = vset.pattern.permute.xlu1 %v1210_v16  ;;  %228 = vperm.xlu2 %1092, %v1328_v13  }
  0x61   :  { %224 = vperm.xlu1 %1093, %v1310_v10  }
  0x63   :  { %1108 = vset.pattern.permute.xlu0 %v1214_v21 }
  0x64   :  { %357 = vperm.xlu0 %1108, %v1323_v12  }
  0x65   :  { %v1353_v22 = vpop.permute.xlu2 %67 }
  0x68   :  { %1096 = vset.pattern.permute.xlu2 %v1215_v23 }
  0x69   :  { %1095 = vset.pattern.permute.xlu1 %v1215_v23  ;;  %249 = vperm.xlu2 %1096, %v1310_v10  }
  0x6a   :  { %245 = vperm.xlu1 %1095, %v1315_v11  }
  0x6c   :  { %1111 = vset.pattern.permute.xlu0 %v1216_v24 }
  0x6d   :  { %395 = vperm.xlu0 %1111, %v1315_v11  }
  0x6e   :  { %v90_v25 = vpop.permute.xlu2 %89 }
  0x71   :  { %257 = vperm.xlu2 %1096, %v1323_v12  }
  0x72   :  { %253 = vperm.xlu1 %1095, %v1328_v13  }
  0x74   :  { %v1361_v26 = vpop.permute.xlu1 %49 }
  0x75   :  { %1115 = vset.pattern.permute.xlu0 %v1217_v27  ;;  %v40_v28 = vpop.permute.xlu0 %39 }
  0x76   :  { %424 = vperm.xlu0 %1115, %v1310_v10   ;;  %v1365_v29 = vpop.permute.xlu2 %99  ;;  %v58_v38 = vmul.f32 %v1382_v36, %v40_v28 }
  0x78   :  { %v83_v42 = vadd.f32 %v79_v37, %v58_v38 }
  0x79   :  { %1099 = vset.pattern.permute.xlu2 %v1211_v17 }
  0x7a   :  { %1098 = vset.pattern.permute.xlu1 %v1211_v17  ;;  %278 = vperm.xlu2 %1099, %v1328_v13   ;;  %v107_v44 = vadd.f32 %v90_v25, %v83_v42 }
  0x7b   :  { %274 = vperm.xlu1 %1098, %v1310_v10  }
  0x7c   :  { %v1369_v30 = vpop.permute.xlu1 %54  ;;  %v115_v45 = vmul.f32 0.2, %v107_v44  ;;  %vm111_vm0 = vcmp.ge.f32.partialorder %v107_v44, 0.0 }
  0x7d   :  { %v1371_v31 = vpop.permute.xlu0 %44 }
  0x7e   :  { %1119 = vset.pattern.permute.xlu0 %v1218_v33  ;;  %v1377_v34 = vpop.permute.xlu2 %138  ;;  %v1406_v50 = vsel %vm111_vm0, %v107_v44, %v115_v45  ;;  %v59_v38 = vmul.f32 %v1382_v36, %v1371_v31 }
  0x7f   :  { %453 = vperm.xlu0 %1119, %v1328_v13   ;;  %v1413_v51 = vperm.slane %v1406_v50, 1  ;;  %v1424_v57 = vperm.slane %v1406_v50, 2  ;;  %v1437_v0 = vperm.slane %v1406_v50, 3  ;;  %v1448_v9 = vperm.slane %v1406_v50, 0 }
  0x80   :  { %v1451_v14 = vperm.slane %v1406_v50, 4  ;;  %v1467_v37 = vperm.slane %v1406_v50, 6 }
  0x82   :  { %1100 = vset.pattern.permute.xlu2 %v1212_v18 }
  0x83   :  { %282 = vperm.xlu1 %1098, %v1323_v12   ;;  %295 = vperm.xlu2 %1100, %v1315_v11  }
  0x85   :  { %v1388_v39 = vpop.permute.xlu0 %104 }
  0x86   :  { %v1390_v40 = vpop.permute.xlu1 %75  ;;  %v1392_v41 = vpop.permute.xlu2 %148 }
  0x87   :  { %1122 = vset.pattern.permute.xlu0 %v1219_v43  ;;  %v155_v17 = vmul.f32 %v1448_v9, %v1392_v41 }
  0x88   :  { %482 = vperm.xlu0 %1122, %v1323_v12  }
  0x8b   :  { %1102 = vset.pattern.permute.xlu1 %v1212_v18  ;;  %307 = vperm.xlu2 %1100, %v1323_v12  }
  0x8c   :  { %303 = vperm.xlu1 %1102, %v1328_v13  }
  0x8f   :  { %v1398_v46 = vpop.permute.xlu0 %71  ;;  %v1400_v47 = vpop.permute.xlu1 %94 }
  0x90   :  { %v1402_v48 = vpop.permute.xlu2 %165  ;;  %1125 = vset.pattern.permute.xlu0 %v1220_v49 }
  0x91   :  { %520 = vperm.xlu0 %1125, %v1315_v11  }
  0x93   :  { %1104 = vset.pattern.permute.xlu2 %v1213_v19 }
  0x94   :  { %1103 = vset.pattern.permute.xlu1 %v1213_v19  ;;  %324 = vperm.xlu2 %1104, %v1310_v10  }
  0x95   :  { %320 = vperm.xlu1 %1103, %v1315_v11  }
  0x97   :  { %v158_v52 = vpop.permute.xlu0 %157  ;;  %v134_v53 = vpop.permute.xlu1 %133 }
  0x98   :  { %v1416_v54 = vmul.f32 %v1413_v51, %v158_v52  ;;  %v179_v55 = vpop.permute.xlu2 %178  ;;  %v152_v18 = vmul.f32 %v1448_v9, %v134_v53  ;;  %v80_v53 = vmul.f32 %v1379_v35, %v1353_v22 }
  0x99   :  { %1129 = vset.pattern.permute.xlu0 %v1221_v56  ;;  %v194_v45 = vmul.f32 %v1424_v57, %v179_v55 }
  0x9a   :  { %549 = vperm.xlu0 %1129, %v1310_v10   ;;  %v84_v31 = vadd.f32 %v80_v53, %v59_v38 }
  0x9c   :  { %1106 = vset.pattern.permute.xlu2 %v1214_v21  ;;  %v108_v55 = vadd.f32 %v1400_v47, %v84_v31  ;;  %v1227_v47 = vmov 23   ;;  %v1228_v31 = vmov 24  }
  0x9d   :  { %332 = vperm.xlu1 %1103, %v1323_v12   ;;  %345 = vperm.xlu2 %1106, %v1315_v11  }
  0x9e   :  { %vm112_vm1 = vcmp.ge.f32.partialorder %v108_v55, 0.0 }
  0x9f   :  { %v144_v58 = vpop.permute.xlu1 %143 }
  0xa0   :  { %v183_v59 = vpop.permute.xlu0 %182  ;;  %v1426_v60 = vpop.permute.xlu2 %190  ;;  %v154_v41 = vmul.f32 %v1448_v9, %v144_v58  ;;  %v1487_v58 = vperm.slane %v1406_v50, 5 }
  0xa1   :  { %v1429_v61 = vmul.f32 %v1424_v57, %v183_v59 }
  0xa2   :  { %1133 = vset.pattern.permute.xlu0 %v1222_v62 }
  0xa3   :  { %578 = vperm.xlu0 %1133, %v1328_v13  }
  0xa5   :  { %1107 = vset.pattern.permute.xlu1 %v1214_v21  ;;  %353 = vperm.xlu2 %1106, %v1328_v13   ;;  %v1225_v21 = vmov 21  }
  0xa6   :  { %349 = vperm.xlu1 %1107, %v1310_v10  }
  0xa8   :  { %v162_v63 = vpop.permute.xlu1 %161 }
  0xa9   :  { %v208_v1 = vpop.permute.xlu0 %207  ;;  %v204_v2 = vpop.permute.xlu2 %203 }
  0xaa   :  { %v1440_v4 = vmul.f32 %v1437_v0, %v208_v1  ;;  %v216_v5 = vmul.f32 %v1437_v0, %v204_v2  ;;  %v1226_v1 = vmov 22  }
  0xab   :  { %1136 = vset.pattern.permute.xlu0 %v1223_v6 }
  0xac   :  { %607 = vperm.xlu0 %1136, %v1323_v12  }
  0xad   :  { %1110 = vset.pattern.permute.xlu2 %v1224_v7 }
  0xae   :  { %1109 = vset.pattern.permute.xlu1 %v1224_v7  ;;  %374 = vperm.xlu2 %1110, %v1310_v10  }
  0xaf   :  { %370 = vperm.xlu1 %1109, %v1315_v11  }
  0xb0   :  { %v170_v8 = vpop.permute.xlu1 %169 }
  0xb2   :  { %v233_v15 = vpop.permute.xlu0 %232  ;;  %v221_v16 = vpop.permute.xlu2 %220 }
  0xb3   :  { %v239_v19 = vmul.f32 %v1451_v14, %v233_v15  ;;  %v236_v20 = vmul.f32 %v1451_v14, %v221_v16  ;;  %v1490_v15 = vperm.slane %v1406_v50, 7  ;;  %v174_v16 = vmul.f32 %v1413_v51, %v162_v63 }
  0xb4   :  { %1139 = vset.pattern.permute.xlu0 %v1225_v21 }
  0xb5   :  { %v1459_v23 = vadd.f32 %v239_v19, %v155_v17  ;;  %v1461_v25 = vadd.f32 %v236_v20, %v152_v18  ;;  %645 = vperm.xlu0 %1139, %v1315_v11  }
  0xb6   :  { %382 = vperm.xlu2 %1110, %v1323_v12  }
  0xb7   :  { %378 = vperm.xlu1 %1109, %v1328_v13  }
  0xb9   :  { %v187_v28 = vpop.permute.xlu1 %186 }
  0xba   :  { %v229_v32 = vpop.permute.xlu2 %228 }
  0xbb   :  { %v238_v42 = vmul.f32 %v1451_v14, %v229_v32  ;;  %v271_v44 = vpop.permute.xlu0 %270 }
  0xbc   :  { %v286_v52 = vmul.f32 %v1467_v37, %v271_v44 }
  0xbd   :  { %v242_v59 = vadd.f32 %v238_v42, %v154_v41  ;;  %1143 = vset.pattern.permute.xlu0 %v1226_v1  ;;  %v176_v42 = vmul.f32 %v1413_v51, %v170_v8 }
  0xbe   :  { %v1478_v2 = vadd.f32 %v286_v52, %v194_v45  ;;  %674 = vperm.xlu0 %1143, %v1310_v10   ;;  %1113 = vset.pattern.permute.xlu2 %v1216_v24 }
  0xbf   :  { %1112 = vset.pattern.permute.xlu1 %v1216_v24  ;;  %403 = vperm.xlu2 %1113, %v1328_v13   ;;  %v116_v24 = vmul.f32 0.2, %v108_v55 }
  0xc0   :  { %399 = vperm.xlu1 %1112, %v1310_v10  }
  0xc1   :  { %v1504_v50 = vsel %vm112_vm1, %v108_v55, %v116_v24 }
  0xc2   :  { %v200_v22 = vpop.permute.xlu1 %199  ;;  %v1526_v24 = vperm.slane %v1504_v50, 1 }
  0xc3   :  { %v250_v7 = vpop.permute.xlu2 %249 }
  0xc4   :  { %v262_v17 = vmul.f32 %v1487_v58, %v250_v7  ;;  %v300_v18 = vpop.permute.xlu0 %299  ;;  %v153_v7 = vmul.f32 %v1448_v9, %v1377_v34 }
  0xc5   :  { %v312_v19 = vmul.f32 %v1490_v15, %v300_v18  ;;  %v196_v18 = vmul.f32 %v1424_v57, %v187_v28 }
  0xc6   :  { %v1495_v20 = vadd.f32 %v262_v17, %v174_v16  ;;  %1147 = vset.pattern.permute.xlu0 %v1227_v47 }
  0xc7   :  { %v1498_v32 = vadd.f32 %v312_v19, %v216_v5  ;;  %703 = vperm.xlu0 %1147, %v1328_v13   ;;  %1114 = vset.pattern.permute.xlu2 %v1217_v27  ;;  %v1510_v5 = vperm.slane %v1504_v50, 0 }
  0xc8   :  { %407 = vperm.xlu1 %1112, %v1323_v12   ;;  %420 = vperm.xlu2 %1114, %v1315_v11  }
  0xca   :  { %v212_v63 = vpop.permute.xlu1 %211 }
  0xcb   :  { %v218_v38 = vmul.f32 %v1437_v0, %v212_v63  ;;  %v258_v41 = vpop.permute.xlu2 %257 }
  0xcc   :  { %v264_v44 = vmul.f32 %v1487_v58, %v258_v41 }
  0xcd   :  { %v329_v45 = vpop.permute.xlu0 %328 }
  0xce   :  { %v268_v52 = vadd.f32 %v264_v44, %v176_v42  ;;  %v338_v53 = vmul.f32 %v1510_v5, %v329_v45  ;;  %v1229_v42 = vmov 26   ;;  %v215_v44 = vmul.f32 %v1437_v0, %v200_v22 }
  0xcf   :  { %1150 = vset.pattern.permute.xlu0 %v1228_v31 }
  0xd0   :  { %v1514_v55 = vadd.f32 %v338_v53, %v242_v59  ;;  %732 = vperm.xlu0 %1150, %v1323_v12   ;;  %1116 = vset.pattern.permute.xlu1 %v1217_v27 }
  0xd1   :  { %432 = vperm.xlu2 %1114, %v1323_v12   ;;  %428 = vperm.xlu1 %1116, %v1328_v13  }
  0xd3   :  { %v225_v8 = vpop.permute.xlu1 %224 }
  0xd4   :  { %v237_v16 = vmul.f32 %v1451_v14, %v225_v8  ;;  %v279_v17 = vpop.permute.xlu2 %278 }
  0xd5   :  { %v288_v59 = vmul.f32 %v1467_v37, %v279_v17 }
  0xd6   :  { %v241_v19 = vadd.f32 %v237_v16, %v153_v7  ;;  %v358_v27 = vpop.permute.xlu0 %357  ;;  %v1230_v16 = vmov 27  }
  0xd7   :  { %v1528_v63 = vadd.f32 %v288_v59, %v196_v18  ;;  %v364_v41 = vmul.f32 %v1526_v24, %v358_v27 }
  0xd8   :  { %1153 = vset.pattern.permute.xlu0 %v1229_v42 }
  0xd9   :  { %v1532_v34 = vadd.f32 %v364_v41, %v268_v52  ;;  %1118 = vset.pattern.permute.xlu2 %v1218_v33  ;;  %770 = vperm.xlu0 %1153, %v1315_v11   ;;  %v1543_v52 = vperm.slane %v1504_v50, 3  ;;  %v1559_v41 = vperm.slane %v1504_v50, 4 }
  0xda   :  { %1117 = vset.pattern.permute.xlu1 %v1218_v33  ;;  %449 = vperm.xlu2 %1118, %v1310_v10  }
  0xdb   :  { %445 = vperm.xlu1 %1117, %v1315_v11  }
  0xdc   :  { %v246_v9 = vpop.permute.xlu1 %245 }
  0xdd   :  { %v261_v14 = vmul.f32 %v1487_v58, %v246_v9  ;;  %v296_v28 = vpop.permute.xlu2 %295 }
  0xde   :  { %v311_v45 = vmul.f32 %v1490_v15, %v296_v28 }
  0xdf   :  { %v265_v53 = vadd.f32 %v261_v14, %v1416_v54  ;;  %v396_v8 = vpop.permute.xlu0 %395  ;;  %v175_v54 = vmul.f32 %v1413_v51, %v1402_v48 }
  0xe0   :  { %v315_v7 = vadd.f32 %v311_v45, %v215_v44  ;;  %v411_v33 = vmul.f32 %v1543_v52, %v396_v8  ;;  %v1231_v44 = vmov 28  }
  0xe1   :  { %1157 = vset.pattern.permute.xlu0 %v1230_v16 }
  0xe2   :  { %v1548_v17 = vadd.f32 %v411_v33, %v315_v7  ;;  %1120 = vset.pattern.permute.xlu2 %v1219_v43  ;;  %799 = vperm.xlu0 %1157, %v1310_v10   ;;  %v1575_v7 = vperm.slane %v1504_v50, 5 }
  0xe3   :  { %457 = vperm.xlu1 %1117, %v1323_v12   ;;  %470 = vperm.xlu2 %1120, %v1315_v11  }
  0xe4   :  { %v254_v0 = vpop.permute.xlu1 %253 }
  0xe5   :  { %v263_v22 = vmul.f32 %v1487_v58, %v254_v0  ;;  %v308_v18 = vpop.permute.xlu2 %307 }
  0xe6   :  { %v314_v59 = vmul.f32 %v1490_v15, %v308_v18  ;;  %v1232_v18 = vmov 15  }
  0xe7   :  { %v267_v27 = vadd.f32 %v263_v22, %v175_v54 }
  0xe8   :  { %v1561_v9 = vadd.f32 %v314_v59, %v218_v38  ;;  %v425_v14 = vpop.permute.xlu0 %424  ;;  %v81_v38 = vmul.f32 %v1379_v35, %v1398_v46  ;;  %v1233_v46 = vmov 30  }
  0xe9   :  { %v437_v28 = vmul.f32 %v1559_v41, %v425_v14 }
  0xea   :  { %1161 = vset.pattern.permute.xlu0 %v1231_v44 }
  0xeb   :  { %1121 = vset.pattern.permute.xlu1 %v1219_v43  ;;  %478 = vperm.xlu2 %1120, %v1328_v13   ;;  %v60_v43 = vmul.f32 %v1382_v36, %v1361_v26  ;;  %v197_v26 = vmul.f32 %v1424_v57, %v1426_v60  ;;  %v1234_v57 = vmov 31  }
  0xec   :  { %828 = vperm.xlu0 %1161, %v1328_v13   ;;  %474 = vperm.xlu1 %1121, %v1310_v10  }
  0xed   :  { %v275_v48 = vpop.permute.xlu1 %274  ;;  %v85_v22 = vadd.f32 %v81_v38, %v60_v43 }
  0xee   :  { %v287_v51 = vmul.f32 %v1467_v37, %v275_v48  ;;  %v325_v58 = vpop.permute.xlu2 %324 }
  0xef   :  { %v337_v45 = vmul.f32 %v1510_v5, %v325_v58  ;;  %v109_v14 = vadd.f32 %v1365_v29, %v85_v22  ;;  %v1592_v58 = vperm.slane %v1504_v50, 6 }
  0xf0   :  { %v291_v8 = vadd.f32 %v287_v51, %v1429_v61 }
  0xf1   :  { %v341_v33 = vadd.f32 %v337_v45, %v241_v19  ;;  %v454_v0 = vpop.permute.xlu0 %453  ;;  %v117_v43 = vmul.f32 0.2, %v109_v14  ;;  %vm113_vm2 = vcmp.ge.f32.partialorder %v109_v14, 0.0 }
  0xf2   :  { %v463_v54 = vmul.f32 %v1575_v7, %v454_v0 }
  0xf3   :  { %1124 = vset.pattern.permute.xlu2 %v1232_v18  ;;  %v1580_v59 = vadd.f32 %v437_v28, %v341_v33  ;;  %v1601_v60 = vsel %vm113_vm2, %v109_v14, %v117_v43 }
  0xf4   :  { %1164 = vset.pattern.permute.xlu0 %v1233_v46  ;;  %1123 = vset.pattern.permute.xlu1 %v1232_v18  ;;  %v1623_v43 = vperm.slane %v1601_v60, 1 }
  0xf5   :  { %499 = vperm.xlu2 %1124, %v1310_v10   ;;  %870 = vperm.xlu0 %1164, %v1315_v11   ;;  %v283_v61 = vpop.permute.xlu1 %282 }
  0xf6   :  { %495 = vperm.xlu1 %1123, %v1315_v11   ;;  %v289_v19 = vmul.f32 %v1467_v37, %v283_v61  ;;  %v1607_v61 = vperm.slane %v1601_v60, 0 }
  0xf7   :  { %v346_v28 = vpop.permute.xlu2 %345 }
  0xf8   :  { %v293_v48 = vadd.f32 %v289_v19, %v197_v26  ;;  %v361_v51 = vmul.f32 %v1526_v24, %v346_v28 }
  0xfa   :  { %v1594_v38 = vadd.f32 %v361_v51, %v265_v53  ;;  %v483_v45 = vpop.permute.xlu0 %482 }
  0xfb   :  { %v489_v33 = vmul.f32 %v1592_v58, %v483_v45 }
  0xfd   :  { %507 = vperm.xlu2 %1124, %v1323_v12   ;;  %1167 = vset.pattern.permute.xlu0 %v1234_v57 }
  0xfe   :  { %503 = vperm.xlu1 %1123, %v1328_v13   ;;  %899 = vperm.xlu0 %1167, %v1310_v10   ;;  %v304_v29 = vpop.permute.xlu1 %303 }
  0xff   :  { %v313_v37 = vmul.f32 %v1490_v15, %v304_v29  ;;  %v354_v53 = vpop.permute.xlu2 %353 }
 0x100   :  { %v363_v0 = vmul.f32 %v1526_v24, %v354_v53 }
 0x101   :  { %v317_v22 = vadd.f32 %v313_v37, %v1440_v4  ;;  %v385_v4 = vperm.slane %v1504_v50, 2 }
 0x102   :  { %v367_v18 = vadd.f32 %v363_v0, %v267_v27 }
 0x103   :  { %v521_v26 = vpop.permute.xlu0 %520 }
 0x104   :  { %v536_v19 = vmul.f32 %v1607_v61, %v521_v26  ;;  %v1610_v28 = vadd.f32 %v463_v54, %v367_v18  ;;  %v1632_v26 = vperm.slane %v1601_v60, 2 }
 0x105   :  { %1127 = vset.pattern.permute.xlu2 %v1220_v49 }
 0x106   :  { %1126 = vset.pattern.permute.xlu1 %v1220_v49  ;;  %528 = vperm.xlu2 %1127, %v1328_v13  }
 0x107   :  { %524 = vperm.xlu1 %1126, %v1310_v10   ;;  %v321_v15 = vpop.permute.xlu1 %320  ;;  %1170 = vset.pattern.permute.xlu0 %v1207_v3 }
 0x108   :  { %v336_v27 = vmul.f32 %v1510_v5, %v321_v15  ;;  %v375_v14 = vpop.permute.xlu2 %374 }
 0x109   :  { %v387_v51 = vmul.f32 %v385_v4, %v375_v14 }
 0x10a   :  { %v340_v54 = vadd.f32 %v336_v27, %v1461_v25 }
 0x10b   :  { %v1620_v45 = vadd.f32 %v387_v51, %v291_v8 }
 0x10c   :  { %v550_v49 = vpop.permute.xlu0 %549 }
 0x10d   :  { %v562_v29 = vmul.f32 %v1623_v43, %v550_v49 }
 0x10e   :  { %1128 = vset.pattern.permute.xlu2 %v1221_v56 }
 0x10f   :  { %532 = vperm.xlu1 %1126, %v1323_v12   ;;  %545 = vperm.xlu2 %1128, %v1315_v11   ;;  %v333_v37 = vpop.permute.xlu1 %332 }
 0x110   :  { %v339_v53 = vmul.f32 %v1510_v5, %v333_v37  ;;  %v383_v0 = vpop.permute.xlu2 %382 }
 0x111   :  { %v389_v18 = vmul.f32 %v385_v4, %v383_v0 }
 0x112   :  { %v343_v25 = vadd.f32 %v339_v53, %v1459_v23 }
 0x113   :  { %v393_v8 = vadd.f32 %v389_v18, %v293_v48 }
 0x115   :  { %v579_v15 = vpop.permute.xlu0 %578  ;;  %v1634_v27 = vadd.f32 %v489_v33, %v393_v8  ;;  %v1648_v33 = vperm.slane %v1601_v60, 3 }
 0x116   :  { %v1637_v14 = vmul.f32 %v1632_v26, %v579_v15 }
 0x117   :  { %1130 = vset.pattern.permute.xlu1 %v1221_v56  ;;  %557 = vperm.xlu2 %1128, %v1323_v12  }
 0x118   :  { %553 = vperm.xlu1 %1130, %v1328_v13   ;;  %v350_v5 = vpop.permute.xlu1 %349 }
 0x119   :  { %v362_v51 = vmul.f32 %v1526_v24, %v350_v5  ;;  %v404_v23 = vpop.permute.xlu2 %403 }
 0x11a   :  { %v413_v48 = vmul.f32 %v1543_v52, %v404_v23 }
 0x11b   :  { %v366_v49 = vadd.f32 %v362_v51, %v1495_v20 }
 0x11c   :  { %v1645_v37 = vadd.f32 %v413_v48, %v317_v22 }
 0x11e   :  { %v608_v53 = vpop.permute.xlu0 %607 }
 0x11f   :  { %1132 = vset.pattern.permute.xlu2 %v1222_v62  ;;  %v1652_v56 = vmul.f32 %v1648_v33, %v608_v53 }
 0x120   :  { %1131 = vset.pattern.permute.xlu1 %v1222_v62  ;;  %574 = vperm.xlu2 %1132, %v1310_v10  }
 0x121   :  { %570 = vperm.xlu1 %1131, %v1315_v11   ;;  %v371_v24 = vpop.permute.xlu1 %370 }
 0x122   :  { %v386_v0 = vmul.f32 %v385_v4, %v371_v24  ;;  %v421_v20 = vpop.permute.xlu2 %420 }
 0x123   :  { %v436_v22 = vmul.f32 %v1559_v41, %v421_v20 }
 0x124   :  { %v390_v18 = vadd.f32 %v386_v0, %v1478_v2 }
 0x125   :  { %v440_v8 = vadd.f32 %v436_v22, %v340_v54 }
 0x127   :  { %v1659_v15 = vadd.f32 %v536_v19, %v440_v8 }
 0x128   :  { %1134 = vset.pattern.permute.xlu2 %v1223_v6 }
 0x129   :  { %582 = vperm.xlu1 %1131, %v1323_v12   ;;  %595 = vperm.xlu2 %1134, %v1315_v11   ;;  %v379_v62 = vpop.permute.xlu1 %378 }
 0x12a   :  { %v388_v5 = vmul.f32 %v385_v4, %v379_v62 }
 0x12b   :  { %v433_v51 = vpop.permute.xlu2 %432 }
 0x12c   :  { %v392_v23 = vadd.f32 %v388_v5, %v1528_v63  ;;  %v439_v48 = vmul.f32 %v1559_v41, %v433_v51  ;;  %v1235_v63 = vmov 20  }
 0x12e   :  { %v1666_v53 = vadd.f32 %v439_v48, %v343_v25 }
 0x131   :  { %1135 = vset.pattern.permute.xlu1 %v1223_v6  ;;  %603 = vperm.xlu2 %1134, %v1328_v13  }
 0x132   :  { %599 = vperm.xlu1 %1135, %v1310_v10   ;;  %v400_v2 = vpop.permute.xlu1 %399 }
 0x133   :  { %v412_v19 = vmul.f32 %v1543_v52, %v400_v2  ;;  %v510_v2 = vperm.slane %v1504_v50, 7 }
 0x134   :  { %v450_v54 = vpop.permute.xlu2 %449 }
 0x135   :  { %v416_v24 = vadd.f32 %v412_v19, %v1498_v32  ;;  %v462_v4 = vmul.f32 %v1575_v7, %v450_v54 }
 0x137   :  { %v466_v0 = vadd.f32 %v462_v4, %v366_v49 }
 0x139   :  { %1138 = vset.pattern.permute.xlu2 %v1235_v63  ;;  %v1674_v20 = vadd.f32 %v562_v29, %v466_v0 }
 0x13a   :  { %1137 = vset.pattern.permute.xlu1 %v1235_v63  ;;  %624 = vperm.xlu2 %1138, %v1310_v10   ;;  %v408_v6 = vpop.permute.xlu1 %407 }
 0x13b   :  { %620 = vperm.xlu1 %1137, %v1315_v11   ;;  %v414_v25 = vmul.f32 %v1543_v52, %v408_v6 }
 0x13d   :  { %v418_v22 = vadd.f32 %v414_v25, %v1561_v9  ;;  %v471_v8 = vpop.permute.xlu2 %470 }
 0x13e   :  { %v486_v32 = vmul.f32 %v1592_v58, %v471_v8 }
 0x140   :  { %v1681_v62 = vadd.f32 %v486_v32, %v390_v18 }
 0x142   :  { %632 = vperm.xlu2 %1138, %v1323_v12  }
 0x143   :  { %628 = vperm.xlu1 %1137, %v1328_v13   ;;  %v429_v29 = vpop.permute.xlu1 %428 }
 0x144   :  { %v438_v49 = vmul.f32 %v1559_v41, %v429_v29 }
 0x145   :  { %v479_v5 = vpop.permute.xlu2 %478 }
 0x146   :  { %v442_v51 = vadd.f32 %v438_v49, %v1514_v55  ;;  %v488_v48 = vmul.f32 %v1592_v58, %v479_v5 }
 0x148   :  { %v492_v52 = vadd.f32 %v488_v48, %v392_v23 }
 0x14a   :  { %1141 = vset.pattern.permute.xlu2 %v1225_v21  ;;  %v1690_v9 = vadd.f32 %v1637_v14, %v492_v52 }
 0x14b   :  { %1140 = vset.pattern.permute.xlu1 %v1225_v21  ;;  %653 = vperm.xlu2 %1141, %v1328_v13  }
 0x14c   :  { %649 = vperm.xlu1 %1140, %v1310_v10  }
 0x14d   :  { %v446_v18 = vpop.permute.xlu1 %445 }
 0x14e   :  { %v461_v41 = vmul.f32 %v1575_v7, %v446_v18 }
 0x14f   :  { %v500_v55 = vpop.permute.xlu2 %499 }
 0x150   :  { %v465_v19 = vadd.f32 %v461_v41, %v1594_v38  ;;  %v512_v23 = vmul.f32 %v510_v2, %v500_v55 }
 0x152   :  { %v1698_v54 = vadd.f32 %v512_v23, %v416_v24 }
 0x153   :  { %1142 = vset.pattern.permute.xlu2 %v1226_v1 }
 0x154   :  { %657 = vperm.xlu1 %1140, %v1323_v12   ;;  %670 = vperm.xlu2 %1142, %v1315_v11  }
 0x155   :  { %v458_v21 = vpop.permute.xlu1 %457 }
 0x156   :  { %v464_v14 = vmul.f32 %v1575_v7, %v458_v21 }
 0x157   :  { %v508_v4 = vpop.permute.xlu2 %507 }
 0x158   :  { %v468_v0 = vadd.f32 %v464_v14, %v1532_v34  ;;  %v514_v63 = vmul.f32 %v510_v2, %v508_v4 }
 0x15a   :  { %v518_v50 = vadd.f32 %v514_v63, %v418_v22 }
 0x15c   :  { %1144 = vset.pattern.permute.xlu1 %v1226_v1  ;;  %682 = vperm.xlu2 %1142, %v1323_v12   ;;  %v1708_v38 = vadd.f32 %v1652_v56, %v518_v50  ;;  %v646_v56 = vpop.permute.xlu0 %645 }
 0x15d   :  { %678 = vperm.xlu1 %1144, %v1328_v13  }
 0x15e   :  { %v475_v24 = vpop.permute.xlu1 %474 }
 0x15f   :  { %v487_v6 = vmul.f32 %v1592_v58, %v475_v24  ;;  %v1721_v58 = vperm.slane %v1601_v60, 5 }
 0x160   :  { %v529_v25 = vpop.permute.xlu2 %528 }
 0x161   :  { %v491_v7 = vadd.f32 %v487_v6, %v1620_v45  ;;  %v538_v8 = vmul.f32 %v1607_v61, %v529_v25  ;;  %v661_v49 = vmul.f32 %v1721_v58, %v646_v56  ;;  %v82_v56 = vmul.f32 %v1379_v35, %v1390_v40 }
 0x163   :  { %v1714_v34 = vadd.f32 %v538_v8, %v442_v51 }
 0x164   :  { %1146 = vset.pattern.permute.xlu2 %v1227_v47  ;;  %v675_v55 = vpop.permute.xlu0 %674 }
 0x165   :  { %1145 = vset.pattern.permute.xlu1 %v1227_v47  ;;  %699 = vperm.xlu2 %1146, %v1310_v10  }
 0x166   :  { %695 = vperm.xlu1 %1145, %v1315_v11  }
 0x168   :  { %v496_v1 = vpop.permute.xlu1 %495 }
 0x169   :  { %v511_v22 = vmul.f32 %v510_v2, %v496_v1  ;;  %v546_v32 = vpop.permute.xlu2 %545 }
 0x16a   :  { %v561_v45 = vmul.f32 %v1623_v43, %v546_v32 }
 0x16b   :  { %v515_v29 = vadd.f32 %v511_v22, %v1548_v17 }
 0x16c   :  { %v565_v5 = vadd.f32 %v561_v45, %v465_v19  ;;  %v704_v63 = vpop.permute.xlu0 %703 }
 0x16d   :  { %1148 = vset.pattern.permute.xlu2 %v1228_v31 }
 0x16e   :  { %707 = vperm.xlu1 %1145, %v1323_v12   ;;  %720 = vperm.xlu2 %1148, %v1315_v11   ;;  %v1729_v47 = vadd.f32 %v661_v49, %v565_v5 }
 0x170   :  { %v504_v51 = vpop.permute.xlu1 %503 }
 0x171   :  { %v513_v48 = vmul.f32 %v510_v2, %v504_v51  ;;  %v558_v52 = vpop.permute.xlu2 %557  ;;  %v1740_v2 = vperm.slane %v1601_v60, 6 }
 0x172   :  { %v564_v18 = vmul.f32 %v1623_v43, %v558_v52 }
 0x173   :  { %v517_v41 = vadd.f32 %v513_v48, %v1645_v37  ;;  %v687_v4 = vmul.f32 %v1740_v2, %v675_v55 }
 0x174   :  { %v1733_v17 = vadd.f32 %v564_v18, %v468_v0 }
 0x176   :  { %1149 = vset.pattern.permute.xlu1 %v1228_v31  ;;  %728 = vperm.xlu2 %1148, %v1328_v13   ;;  %v1236_v31 = vmov 25  }
 0x177   :  { %724 = vperm.xlu1 %1149, %v1310_v10  }
 0x179   :  { %v525_v19 = vpop.permute.xlu1 %524 }
 0x17a   :  { %v537_v23 = vmul.f32 %v1607_v61, %v525_v19  ;;  %v575_v21 = vpop.permute.xlu2 %574 }
 0x17b   :  { %v587_v14 = vmul.f32 %v1632_v26, %v575_v21 }
 0x17c   :  { %v541_v37 = vadd.f32 %v537_v23, %v1580_v59 }
 0x17d   :  { %v591_v0 = vadd.f32 %v587_v14, %v491_v7  ;;  %v733_v7 = vpop.permute.xlu0 %732 }
 0x17e   :  { %1152 = vset.pattern.permute.xlu2 %v1236_v31 }
 0x17f   :  { %1151 = vset.pattern.permute.xlu1 %v1236_v31  ;;  %749 = vperm.xlu2 %1152, %v1310_v10   ;;  %v1746_v50 = vadd.f32 %v687_v4, %v591_v0 }
 0x180   :  { %745 = vperm.xlu1 %1151, %v1315_v11  }
 0x181   :  { %v533_v24 = vpop.permute.xlu1 %532 }
 0x182   :  { %v539_v6 = vmul.f32 %v1607_v61, %v533_v24  ;;  %v61_v61 = vmul.f32 %v1382_v36, %v1369_v30 }
 0x183   :  { %v596_v25 = vpop.permute.xlu2 %595 }
 0x184   :  { %v543_v8 = vadd.f32 %v539_v6, %v1666_v53  ;;  %v611_v59 = vmul.f32 %v1648_v33, %v596_v25  ;;  %v1762_v53 = vperm.slane %v1601_v60, 7  ;;  %v1179_v25 = vld [vmem:[%s1953_s3 + $0x8] sm:$0xff] }
 0x185   :  { %v771_v36 = vpop.permute.xlu0 %770 }
 0x186   :  { %v1752_v1 = vadd.f32 %v611_v59, %v515_v29  ;;  %v86_v29 = vadd.f32 %v82_v56, %v61_v61  ;;  %v713_v49 = vmul.f32 %v1762_v53, %v704_v63 }
 0x187   :  { %757 = vperm.xlu2 %1152, %v1323_v12  }
 0x188   :  { %753 = vperm.xlu1 %1151, %v1328_v13   ;;  %v110_v30 = vadd.f32 %v1388_v39, %v86_v29 }
 0x18a   :  { %v554_v22 = vpop.permute.xlu1 %553  ;;  %v118_v52 = vmul.f32 0.2, %v110_v30  ;;  %vm114_vm3 = vcmp.ge.f32.partialorder %v110_v30, 0.0 }
 0x18b   :  { %v563_v11 = vmul.f32 %v1623_v43, %v554_v22  ;;  %v604_v32 = vpop.permute.xlu2 %603 }
 0x18c   :  { %v613_v45 = vmul.f32 %v1648_v33, %v604_v32  ;;  %v1792_v39 = vsel %vm114_vm3, %v110_v30, %v118_v52 }
 0x18d   :  { %v567_v12 = vadd.f32 %v563_v11, %v1610_v28  ;;  %v635_v28 = vperm.slane %v1601_v60, 4  ;;  %v1796_v19 = vperm.slane %v1792_v39, 0  ;;  %v1833_v32 = vperm.slane %v1792_v39, 6 }
 0x18e   :  { %v617_v5 = vadd.f32 %v613_v45, %v517_v41  ;;  %v1237_v45 = vmov 29  }
 0x18f   :  { %1155 = vset.pattern.permute.xlu2 %v1229_v42  ;;  %v739_v14 = vmul.f32 %v1796_v19, %v733_v7  ;;  %v1827_v7 = vperm.slane %v1792_v39, 2 }
 0x190   :  { %1154 = vset.pattern.permute.xlu1 %v1229_v42  ;;  %778 = vperm.xlu2 %1155, %v1328_v13   ;;  %v1770_v35 = vadd.f32 %v713_v49, %v617_v5  ;;  %v1789_v13 = vld [vmem:[%s1953_s3] sm:$0xff] }
 0x191   :  { %774 = vperm.xlu1 %1154, %v1310_v10   ;;  %v1783_v10 = vld [vmem:[%s1953_s3 + $0x18] sm:$0xff]  ;;  %v786_v11 = vmul.f32 %v1827_v7, %v771_v36 }
 0x193   :  { %v571_v40 = vpop.permute.xlu1 %570 }
 0x194   :  { %v586_v43 = vmul.f32 %v1632_v26, %v571_v40  ;;  %v625_v51 = vpop.permute.xlu2 %624 }
 0x195   :  { %v637_v48 = vmul.f32 %v635_v28, %v625_v51 }
 0x196   :  { %v590_v18 = vadd.f32 %v586_v43, %v1681_v62  ;;  %v800_v62 = vpop.permute.xlu0 %799 }
 0x197   :  { %v1777_v42 = vadd.f32 %v637_v48, %v541_v37 }
 0x198   :  { %1156 = vset.pattern.permute.xlu2 %v1230_v16 }
 0x199   :  { %782 = vperm.xlu1 %1154, %v1783_v10   ;;  %795 = vperm.xlu2 %1156, %v1789_v13  }
 0x19b   :  { %v583_v60 = vpop.permute.xlu1 %582 }
 0x19c   :  { %v589_v41 = vmul.f32 %v1632_v26, %v583_v60  ;;  %v633_v55 = vpop.permute.xlu2 %632  ;;  %v1807_v26 = vld [vmem:[%s1953_s3 + $0x10] sm:$0xff] }
 0x19d   :  { %v639_v23 = vmul.f32 %v635_v28, %v633_v55  ;;  %v1853_v55 = vperm.slane %v1792_v39, 7 }
 0x19e   :  { %v593_v21 = vadd.f32 %v589_v41, %v1634_v27  ;;  %v1811_v31 = vpop.permute.xlu0 %828 }
 0x19f   :  { %v643_v37 = vadd.f32 %v639_v23, %v543_v8  ;;  %v128_v8 = vld [vmem:[%s1954_s4 + $0x8] sm:$0xff] }
 0x1a0   :  { %938 = vperm.xlu0 %1170, %v128_v8  }
 0x1a1   :  { %1158 = vset.pattern.permute.xlu1 %v1230_v16  ;;  %807 = vperm.xlu2 %1156, %v1783_v10   ;;  %v1802_v4 = vadd.f32 %v739_v14, %v643_v37 }
 0x1a2   :  { %803 = vperm.xlu1 %1158, %v1807_v26  }
 0x1a4   :  { %v600_v0 = vpop.permute.xlu1 %599 }
 0x1a5   :  { %v612_v63 = vmul.f32 %v1648_v33, %v600_v0  ;;  %v654_v27 = vpop.permute.xlu2 %653 }
 0x1a6   :  { %v663_v24 = vmul.f32 %v1721_v58, %v654_v27  ;;  %v871_v56 = vpop.permute.xlu0 %870 }
 0x1a7   :  { %v616_v16 = vadd.f32 %v612_v63, %v1698_v54 }
 0x1a8   :  { %v1815_v6 = vadd.f32 %v663_v24, %v567_v12  ;;  %v886_v12 = vmul.f32 %v1833_v32, %v871_v56 }
 0x1a9   :  { %1160 = vset.pattern.permute.xlu2 %v1231_v44 }
 0x1aa   :  { %1159 = vset.pattern.permute.xlu1 %v1231_v44  ;;  %824 = vperm.xlu2 %1160, %v1179_v25  }
 0x1ab   :  { %820 = vperm.xlu1 %1159, %v1789_v13  }
 0x1ad   :  { %v621_v33 = vpop.permute.xlu1 %620 }
 0x1ae   :  { %v636_v59 = vmul.f32 %v635_v28, %v621_v33  ;;  %v671_v54 = vpop.permute.xlu2 %670  ;;  %v900_v60 = vpop.permute.xlu0 %899 }
 0x1af   :  { %v686_v44 = vmul.f32 %v1740_v2, %v671_v54 }
 0x1b0   :  { %v640_v22 = vadd.f32 %v636_v59, %v1659_v15 }
 0x1b1   :  { %v690_v61 = vadd.f32 %v686_v44, %v590_v18  ;;  %v1847_v18 = vperm.slane %v1792_v39, 3 }
 0x1b2   :  { %1162 = vset.pattern.permute.xlu2 %v1237_v45 }
 0x1b3   :  { %v790_v29 = vadd.f32 %v786_v11, %v690_v61  ;;  %832 = vperm.xlu1 %1159, %v1783_v10   ;;  %845 = vperm.xlu2 %1162, %v1789_v13  }
 0x1b5   :  { %v629_v49 = vpop.permute.xlu1 %628  ;;  %v1838_v5 = vadd.f32 %v886_v12, %v790_v29 }
 0x1b6   :  { %v638_v30 = vmul.f32 %v635_v28, %v629_v49  ;;  %v683_v15 = vpop.permute.xlu2 %682  ;;  %v130_v49 = vld [vmem:[%s1954_s4 + $0x18] sm:$0xff] }
 0x1b7   :  { %v689_v36 = vmul.f32 %v1740_v2, %v683_v15  ;;  %v129_v15 = vld [vmem:[%s1954_s4 + $0x10] sm:$0xff] }
 0x1b8   :  { %v642_v40 = vadd.f32 %v638_v30, %v1714_v34  ;;  %v812_v34 = vmul.f32 %v1847_v18, %v800_v62 }
 0x1b9   :  { %v1842_v43 = vadd.f32 %v689_v36, %v593_v21  ;;  %v912_v21 = vmul.f32 %v1853_v55, %v900_v60  ;;  %v968_v36 = vld [vmem:[%s1955_s5 + $0x8] sm:$0xff]  ;;  %v970_v60 = vld [vmem:[%s1955_s5 + $0x18] sm:$0xff] }
 0x1bb   :  { %1163 = vset.pattern.permute.xlu1 %v1237_v45  ;;  %853 = vperm.xlu2 %1162, %v1807_v26  }
 0x1bc   :  { %849 = vperm.xlu1 %1163, %v1179_v25  }
 0x1be   :  { %v650_v51 = vpop.permute.xlu1 %649 }
 0x1bf   :  { %v662_v48 = vmul.f32 %v1721_v58, %v650_v51  ;;  %v700_v52 = vpop.permute.xlu2 %699  ;;  %v967_v51 = vld [vmem:[%s1955_s5] sm:$0xff] }
 0x1c0   :  { %v712_v28 = vmul.f32 %v1762_v53, %v700_v52 }
 0x1c1   :  { %v666_v41 = vadd.f32 %v662_v48, %v1674_v20 }
 0x1c2   :  { %v716_v23 = vadd.f32 %v712_v28, %v616_v16 }
 0x1c3   :  { %857 = vperm.xlu2 %1162, %v1783_v10  }
 0x1c4   :  { %v816_v14 = vadd.f32 %v812_v34, %v716_v23  ;;  %1165 = vset.pattern.permute.xlu1 %v1233_v46  ;;  %v969_v46 = vld [vmem:[%s1955_s5 + $0x10] sm:$0xff] }
 0x1c5   :  { %874 = vperm.xlu1 %1165, %v1179_v25   ;;  %983 = vperm.xlu0 %1170, %v969_v46  }
 0x1c6   :  { %v658_v37 = vpop.permute.xlu1 %657  ;;  %v1858_v0 = vadd.f32 %v912_v21, %v816_v14 }
 0x1c7   :  { %v664_v63 = vmul.f32 %v1721_v58, %v658_v37 }
 0x1c8   :  { %v721_v20 = vpop.permute.xlu2 %720 }
 0x1c9   :  { %v668_v62 = vadd.f32 %v664_v63, %v1733_v17  ;;  %v736_v27 = vmul.f32 %v1796_v19, %v721_v20  ;;  %v1873_v17 = vperm.slane %v1792_v39, 4 }
 0x1cb   :  { %v1863_v24 = vadd.f32 %v736_v27, %v640_v22  ;;  %1166 = vset.pattern.permute.xlu2 %v1234_v57 }
 0x1cc   :  { %895 = vperm.xlu2 %1166, %v1789_v13   ;;  %v838_v13 = vmul.f32 %v1873_v17, %v1811_v31 }
 0x1cd   :  { %878 = vperm.xlu1 %1165, %v1807_v26  }
 0x1cf   :  { %v679_v16 = vpop.permute.xlu1 %678 }
 0x1d0   :  { %v688_v58 = vmul.f32 %v1740_v2, %v679_v16  ;;  %v729_v25 = vpop.permute.xlu2 %728  ;;  %v760_v2 = vperm.slane %v1792_v39, 1 }
 0x1d1   :  { %v738_v33 = vmul.f32 %v1796_v19, %v729_v25 }
 0x1d2   :  { %v692_v8 = vadd.f32 %v688_v58, %v1690_v9  ;;  %v127_v9 = vld [vmem:[%s1954_s4] sm:$0xff] }
 0x1d3   :  { %v742_v59 = vadd.f32 %v738_v33, %v642_v40  ;;  %v860_v33 = vperm.slane %v1792_v39, 5 }
 0x1d4   :  { %903 = vperm.xlu2 %1166, %v1807_v26  }
 0x1d5   :  { %v1880_v54 = vadd.f32 %v838_v13, %v742_v59  ;;  %882 = vperm.xlu1 %1165, %v1783_v10  }
 0x1d8   :  { %v696_v44 = vpop.permute.xlu1 %695 }
 0x1d9   :  { %v711_v56 = vmul.f32 %v1762_v53, %v696_v44  ;;  %v750_v22 = vpop.permute.xlu2 %749 }
 0x1da   :  { %v762_v11 = vmul.f32 %v760_v2, %v750_v22 }
 0x1db   :  { %v715_v31 = vadd.f32 %v711_v56, %v1752_v1 }
 0x1dc   :  { %v1889_v61 = vadd.f32 %v762_v11, %v666_v41  ;;  %1169 = vset.pattern.permute.xlu2 %v1207_v3 }
 0x1dd   :  { %1168 = vset.pattern.permute.xlu1 %v1234_v57  ;;  %933 = vperm.xlu2 %1169, %v127_v9  }
 0x1de   :  { %907 = vperm.xlu1 %1168, %v1783_v10  }
 0x1e0   :  { %v708_v26 = vpop.permute.xlu1 %707 }
 0x1e1   :  { %v714_v45 = vmul.f32 %v1762_v53, %v708_v26  ;;  %v758_v12 = vpop.permute.xlu2 %757 }
 0x1e2   :  { %v764_v29 = vmul.f32 %v760_v2, %v758_v12 }
 0x1e3   :  { %v718_v1 = vadd.f32 %v714_v45, %v1708_v38 }
 0x1e4   :  { %v768_v30 = vadd.f32 %v764_v29, %v668_v62 }
 0x1e5   :  { %948 = vperm.xlu2 %1169, %v130_v49  }
 0x1e6   :  { %1171 = vset.pattern.permute.xlu1 %v1207_v3 }
 0x1e7   :  { %943 = vperm.xlu1 %1171, %v129_v15  }
 0x1e9   :  { %v725_v57 = vpop.permute.xlu1 %724 }
 0x1ea   :  { %v737_v53 = vmul.f32 %v1796_v19, %v725_v57  ;;  %v779_v10 = vpop.permute.xlu2 %778 }
 0x1eb   :  { %v788_v40 = vmul.f32 %v1827_v7, %v779_v10 }
 0x1ec   :  { %v741_v38 = vadd.f32 %v737_v53, %v1777_v42 }
 0x1ed   :  { %v1912_v48 = vadd.f32 %v788_v40, %v692_v8  ;;  %978 = vperm.xlu2 %1169, %v968_v36  }
 0x1ef   :  { %973 = vperm.xlu1 %1171, %v967_v51  }
 0x1f2   :  { %v746_v3 = vpop.permute.xlu1 %745 }
 0x1f3   :  { %v761_v52 = vmul.f32 %v760_v2, %v746_v3  ;;  %v796_v19 = vpop.permute.xlu2 %795 }
 0x1f4   :  { %v811_v28 = vmul.f32 %v1847_v18, %v796_v19 }
 0x1f5   :  { %v765_v41 = vadd.f32 %v761_v52, %v1729_v47 }
 0x1f6   :  { %v815_v42 = vadd.f32 %v811_v28, %v715_v31 }
 0x1f7   :  { %988 = vperm.xlu1 %1171, %v970_v60  }
 0x1fa   :  { %v754_v34 = vpop.permute.xlu1 %753 }
 0x1fb   :  { %v763_v23 = vmul.f32 %v760_v2, %v754_v34  ;;  %v808_v21 = vpop.permute.xlu2 %807 }
 0x1fc   :  { %v814_v14 = vmul.f32 %v1847_v18, %v808_v21 }
 0x1fd   :  { %v767_v37 = vadd.f32 %v763_v23, %v1815_v6 }
 0x1fe   :  { %v818_v63 = vadd.f32 %v814_v14, %v718_v1 }
 0x203   :  { %v775_v20 = vpop.permute.xlu1 %774 }
 0x204   :  { %v787_v62 = vmul.f32 %v1827_v7, %v775_v20  ;;  %v825_v27 = vpop.permute.xlu2 %824 }
 0x205   :  { %v837_v46 = vmul.f32 %v1873_v17, %v825_v27 }
 0x206   :  { %v791_v16 = vadd.f32 %v787_v62, %v1746_v50 }
 0x207   :  { %v841_v58 = vadd.f32 %v837_v46, %v741_v38 }
 0x20b   :  { %v783_v47 = vpop.permute.xlu1 %782 }
 0x20c   :  { %v789_v25 = vmul.f32 %v1827_v7, %v783_v47 }
 0x20d   :  { %v846_v8 = vpop.permute.xlu2 %845 }
 0x20e   :  { %v793_v13 = vadd.f32 %v789_v25, %v1842_v43  ;;  %v861_v59 = vmul.f32 %v860_v33, %v846_v8 }
 0x210   :  { %v865_v6 = vadd.f32 %v861_v59, %v765_v41 }
 0x214   :  { %v804_v44 = vpop.permute.xlu1 %803 }
 0x215   :  { %v813_v2 = vmul.f32 %v1847_v18, %v804_v44  ;;  %v854_v56 = vpop.permute.xlu2 %853 }
 0x216   :  { %v863_v22 = vmul.f32 %v860_v33, %v854_v56 }
 0x217   :  { %v817_v11 = vadd.f32 %v813_v2, %v1770_v35 }
 0x218   :  { %v867_v9 = vadd.f32 %v863_v22, %v767_v37 }
 0x21a   :  { %v921_v50 = vadd.f32 %v867_v9, %v1880_v54 }
 0x21d   :  { %v821_v31 = vpop.permute.xlu1 %820  ;;  %v858_v26 = vpop.permute.xlu2 %857 }
 0x21e   :  { %v836_v7 = vmul.f32 %v1873_v17, %v821_v31  ;;  %v864_v39 = vmul.f32 %v860_v33, %v858_v26 }
 0x220   :  { %v840_v45 = vadd.f32 %v836_v7, %v1863_v24  ;;  %v868_v43 = vadd.f32 %v864_v39, %v768_v30 }
 0x222   :  { %v919_v12 = vadd.f32 %v865_v6, %v840_v45 }
 0x224   :  { %v923_v29 = vadd.f32 %v919_v12, %v1838_v5 }
 0x225   :  { %v833_v49 = vpop.permute.xlu1 %832 }
 0x226   :  { %v839_v18 = vmul.f32 %v1873_v17, %v833_v49  ;;  %v896_v1 = vpop.permute.xlu2 %895 }
 0x227   :  { %v911_v35 = vmul.f32 %v1853_v55, %v896_v1 }
 0x228   :  { %v843_v15 = vadd.f32 %v839_v18, %v1802_v4  ;;  %v1005_v18 = vstv %s1956_s6  ;;  %s1034_s6 = sshll.u32 %s1957_s7, 4  ;;  %s1035_s6 = int_to_ptr.hbm [resolvable:$true] %s1034_s6 }
 0x229   :  { %v915_v54 = vadd.f32 %v911_v35, %v815_v42 }
 0x22a   :  { %v922_v57 = vadd.f32 %v868_v43, %v843_v15 }
 0x22b   :  { %v927_v53 = vadd.f32 %v923_v29, %v915_v54 }
 0x22e   :  { %v850_v10 = vpop.permute.xlu1 %849  ;;  %v904_v36 = vpop.permute.xlu2 %903 }
 0x22f   :  { %v862_v40 = vmul.f32 %v860_v33, %v850_v10  ;;  %v913_v24 = vmul.f32 %v1853_v55, %v904_v36 }
 0x231   :  { %v866_v30 = vadd.f32 %v862_v40, %v1889_v61  ;;  %v917_v38 = vadd.f32 %v913_v24, %v817_v11 }
 0x233   :  { %v920_v5 = vadd.f32 %v866_v30, %v841_v58 }
 0x237   :  { %v875_v51 = vpop.permute.xlu1 %874  ;;  %v934_v21 = vpop.permute.xlu2 %933 }
 0x238   :  { %v887_v17 = vmul.f32 %v1833_v32, %v875_v51 }
 0x23a   :  { %v891_v3 = vadd.f32 %v887_v17, %v791_v16  ;;  %v951_v16 = vadd.f32 %v934_v21, %v927_v53 }
 0x23c   :  { %v924_v52 = vadd.f32 %v920_v5, %v891_v3  ;;  %vm955_vm6 = vcmp.ge.f32.partialorder %v951_v16, 0.0 }
 0x23e   :  { %v928_v19 = vadd.f32 %v924_v52, %v1858_v0  ;;  %v939_v0 = vpop.permute.xlu0 %938 }
 0x23f   :  { %v879_v4 = vpop.permute.xlu1 %878  ;;  %v949_v27 = vpop.permute.xlu2 %948 }
 0x240   :  { %v888_v28 = vmul.f32 %v1833_v32, %v879_v4  ;;  %v952_v58 = vadd.f32 %v939_v0, %v928_v19 }
 0x242   :  { %v892_v60 = vadd.f32 %v888_v28, %v1912_v48  ;;  %v959_v48 = vmul.f32 0.2, %v951_v16  ;;  %v960_v33 = vmul.f32 0.2, %v952_v58  ;;  %vm956_vm4 = vcmp.ge.f32.partialorder %v952_v58, 0.0 }
 0x244   :  { %v925_v41 = vadd.f32 %v921_v50, %v892_v60 }
 0x246   :  { %v929_v42 = vadd.f32 %v925_v41, %v917_v38  ;;  %v984_v59 = vpop.permute.xlu0 %983 }
 0x247   :  { %v883_v34 = vpop.permute.xlu1 %882 }
 0x248   :  { %v889_v23 = vmul.f32 %v1833_v32, %v883_v34  ;;  %v979_v32 = vpop.permute.xlu2 %978 }
 0x24a   :  { %v893_v61 = vadd.f32 %v889_v23, %v793_v13  ;;  %v964_v13 = vsel %vm956_vm4, %v952_v58, %v960_v33 }
 0x24b   :  { %v992_v2 = vmul.f32 %v979_v32, %v964_v13 }
 0x24c   :  { %v926_v14 = vadd.f32 %v922_v57, %v893_v61 }
 0x250   :  { %v908_v37 = vpop.permute.xlu1 %907 }
 0x251   :  { %v914_v20 = vmul.f32 %v1853_v55, %v908_v37  ;;  %v963_v55 = vsel %vm955_vm6, %v951_v16, %v959_v48 }
 0x253   :  { %v918_v62 = vadd.f32 %v914_v20, %v818_v63 }
 0x255   :  { %v930_v46 = vadd.f32 %v926_v14, %v918_v62 }
 0x257   :  { %v954_v63 = vadd.f32 %v949_v27, %v930_v46 }
 0x259   :  { %v944_v47 = vpop.permute.xlu1 %943  ;;  %v962_v9 = vmul.f32 0.2, %v954_v63  ;;  %vm958_vm7 = vcmp.ge.f32.partialorder %v954_v63, 0.0 }
 0x25a   :  { %v953_v25 = vadd.f32 %v944_v47, %v929_v42 }
 0x25b   :  { %v966_v26 = vsel %vm958_vm7, %v954_v63, %v962_v9 }
 0x25c   :  { %v961_v8 = vmul.f32 0.2, %v953_v25  ;;  %vm957_vm5 = vcmp.ge.f32.partialorder %v953_v25, 0.0 }
 0x25e   :  { %v965_v6 = vsel %vm957_vm5, %v953_v25, %v961_v8 }
 0x25f   :  { %v993_v22 = vmul.f32 %v984_v59, %v965_v6 }
 0x261   :  { %v974_v44 = vpop.permute.xlu1 %973 }
 0x262   :  { %v991_v56 = vmul.f32 %v974_v44, %v963_v55 }
 0x264   :  { %v995_v11 = vadd.f32 %v992_v2, %v991_v56 }
 0x266   :  { %v996_v50 = vadd.f32 %v995_v11, %v993_v22 }
 0x269   :  { %v989_v31 = vpop.permute.xlu1 %988 }
 0x26a   :  { %v994_v7 = vmul.f32 %v989_v31, %v966_v26 }
 0x26c   :  { %v997_v39 = vadd.f32 %v996_v50, %v994_v7 }
 0x26e   :  { %v998_v45 = vrot.slane %v997_v39, 4 }
 0x270   :  { %v999_v43 = vadd.f32 %v998_v45, %v997_v39 }
 0x272   :  { %v1000_v12 = vrot.slane %v999_v43, 2 }
 0x274   :  { %v1001_v29 = vadd.f32 %v1000_v12, %v999_v43 }
 0x276   :  { %v1002_v49 = vrot.slane %v1001_v29, 1 }
 0x278   :  { %v1003_v1 = vadd.f32 %v1002_v49, %v1001_v29 }
 0x27a   :  { %v1006_v35 = vadd.f32 %v1005_v18, %v1003_v1 }
 0x27c   :  { %v1043_v15 = vmul.f32 -1.442695, %v1006_v35 }
 0x27e   :  { %1172 = vpow2.f32 %v1043_v15 }
 0x284   :  { %v1173_v54 = vpop.eup %1172 }
 0x285   :  { %v1010_v57 = vadd.f32 1.0, %v1173_v54 }
 0x287   :  { %1174 = vrcp.f32 %v1010_v57  ;;  %v1022_v40 = vand.u32 2147483648, %v1010_v57  ;;  %v1020_v30 = vand.u32 2147483647, %v1010_v57  ;;  %vm1016_vm9 = vweird.f32 %v1010_v57 }
 0x289   :  { %v1023_v5 = vor.u32 1.1754944e-38, %v1022_v40  ;;  %vm1021_vm11 = vcmp.eq.f32.partialorder %v1020_v30, 8.507059e+37 }
 0x28d   :  { %v1175_v53 = vpop.eup %1174 }
 0x28e   :  { %v1012_v10 = vmul.f32 %v1175_v53, %v1010_v57  ;;  %vm1017_vm8 = vweird.f32 %v1175_v53 }
 0x28f   :  { %vm1018_vm10 = vmor %vm1016_vm9, %vm1017_vm8 }
 0x290   :  { %v1013_v36 = vsub.f32 1.0, %v1012_v10 }
 0x292   :  { %v1014_v24 = vmul.f32 %v1175_v53, %v1013_v36 }
 0x294   :  { %v1015_v38 = vadd.f32 %v1175_v53, %v1014_v24 }
 0x296   :  { %v1019_v51 = vsel %vm1018_vm10, %v1175_v53, %v1015_v38 }
 0x297   :  { %v1024_v17 = vsel %vm1021_vm11, %v1023_v5, %v1019_v51 }
 0x298   :  { %1026 = vst [vmem:[#allocation3] sm:$0x1] %v1024_v17 }
 0x299   :  { %1037 = dma.vmem_to_hbm [thread:$0]  %s1033_s23, 16, %s1035_s6, [#allocation4]  }
 0x29a   :  { %1204 = dma.done.wait [#allocation4], 16  }
 0x29b   :  { %1205 = vsyncadd [#allocation4], 4294967280 }
 0x29c   :  { %1042 = vsyncpa [#allocation4], 1 }

</bundles_post_ra>
